<compile_context>
chip_gen: v5e
topology: v5e:2x2
jax: 0.10.0
libtpu: 0.0.40
codegen_flags: <defaults>
</compile_context>

<pallas_src>
import functools

import jax
import jax.numpy as jnp
from jax.experimental import pallas as pl
from jax.experimental.pallas import tpu as pltpu


# ----------------------------- tiling helpers ------------------------------

def _row_tile(M, cap=256):
    """Largest multiple-of-8 divisor of M that is <= cap and still yields >= 2
    row blocks (so both v7x TensorCores get work); falls back to M."""
    best = M
    t = 8
    limit = min(cap, M // 2)
    while t <= limit:
        if M % t == 0:
            best = t
        t += 8
    return best


def _col_tile(N, cap=512):
    """Largest multiple-of-128 divisor of N <= cap (lane-dense output tiles);
    if N is not a multiple of 128 we must take the full dim ((8,128) rule)."""
    if N % 128 != 0:
        return N
    best = N
    t = 128
    limit = min(cap, N)
    while t <= limit:
        if N % t == 0:
            best = t
        t += 128
    return best


# ----------------------------- Pallas kernels ------------------------------

def _linear_kernel(x_ref, w_ref, b_ref, o_ref, *, relu):
    y = jnp.dot(x_ref[...], w_ref[...],
                preferred_element_type=jnp.float32) + b_ref[...]
    if relu:
        y = jnp.maximum(y, 0.0)
    o_ref[...] = y


def linear(x, w, b, relu=False):
    """Tiled (rows x cols) matmul + bias (+ optional ReLU)."""
    M, K = x.shape
    N = w.shape[1]
    tm = _row_tile(M)
    tn = _col_tile(N)
    return pl.pallas_call(
        functools.partial(_linear_kernel, relu=relu),
        out_shape=jax.ShapeDtypeStruct((M, N), jnp.float32),
        grid=(M // tm, N // tn),
        in_specs=[pl.BlockSpec((tm, K), lambda i, j: (i, 0)),
                  pl.BlockSpec((K, tn), lambda i, j: (0, j)),
                  pl.BlockSpec((1, tn), lambda i, j: (0, j))],
        out_specs=pl.BlockSpec((tm, tn), lambda i, j: (i, j)),
        compiler_params=pltpu.CompilerParams(
            dimension_semantics=("parallel", "parallel")),
    )(x, w, b.reshape(1, N))


def _layernorm(z, gamma, beta, eps=1e-5):
    mu = jnp.mean(z, axis=-1, keepdims=True)
    var = jnp.mean((z - mu) ** 2, axis=-1, keepdims=True)
    return (z - mu) * jax.lax.rsqrt(var + eps) * gamma + beta


def _attn_tail_ffn_kernel(o_ref, x_ref, wo_ref, bo_ref, g1_ref, be1_ref,
                          w1_ref, b1_ref, w2_ref, b2_ref, g2_ref, be2_ref,
                          y_ref):
    # Fused tail of a TransformerEncoderLayer (post-attention, eval mode):
    #   h = LN1(x + attn_out @ Wo + bo)
    #   y = LN2(h + relu(h @ W1 + b1) @ W2 + b2)
    h = (jnp.dot(o_ref[...], wo_ref[...], preferred_element_type=jnp.float32)
         + bo_ref[...] + x_ref[...])
    h = _layernorm(h, g1_ref[...], be1_ref[...])
    f = jnp.maximum(
        jnp.dot(h, w1_ref[...], preferred_element_type=jnp.float32)
        + b1_ref[...], 0.0)
    y = (jnp.dot(f, w2_ref[...], preferred_element_type=jnp.float32)
         + b2_ref[...] + h)
    y_ref[...] = _layernorm(y, g2_ref[...], be2_ref[...])


def attn_tail_ffn(o2, x2, p):
    """Fused out_proj + residual + LN1 + FFN + residual + LN2.
    d_model and dim_ff are kept whole so the LayerNorm axes live fully inside
    one block; rows are tiled / parallel across cores."""
    M, D = x2.shape
    F = p["w1"].shape[1]
    tm = _row_tile(M)
    row = lambda i: (i, 0)
    full = lambda i: (0, 0)
    return pl.pallas_call(
        _attn_tail_ffn_kernel,
        out_shape=jax.ShapeDtypeStruct((M, D), jnp.float32),
        grid=(M // tm,),
        in_specs=[pl.BlockSpec((tm, D), row),        # attention output
                  pl.BlockSpec((tm, D), row),        # residual (layer input)
                  pl.BlockSpec((D, D), full),        # out_proj_w
                  pl.BlockSpec((1, D), full),        # out_proj_b
                  pl.BlockSpec((1, D), full),        # ln1 gamma
                  pl.BlockSpec((1, D), full),        # ln1 beta
                  pl.BlockSpec((D, F), full),        # w1
                  pl.BlockSpec((1, F), full),        # b1
                  pl.BlockSpec((F, D), full),        # w2
                  pl.BlockSpec((1, D), full),        # b2
                  pl.BlockSpec((1, D), full),        # ln2 gamma
                  pl.BlockSpec((1, D), full)],       # ln2 beta
        out_specs=pl.BlockSpec((tm, D), row),
        compiler_params=pltpu.CompilerParams(
            dimension_semantics=("parallel",)),
    )(o2, x2,
      p["out_proj_w"], p["out_proj_b"].reshape(1, D),
      p["ln1_g"].reshape(1, D), p["ln1_b"].reshape(1, D),
      p["w1"], p["b1"].reshape(1, F),
      p["w2"], p["b2"].reshape(1, D),
      p["ln2_g"].reshape(1, D), p["ln2_b"].reshape(1, D))


def _attn_kernel(qkv_ref, o_ref, *, n_heads, d_model):
    # qkv_ref: (nb, L, 3*D) -- q|k|v packed in the lane dim, heads packed in D.
    D = d_model
    dh = D // n_heads
    scale = 1.0 / jnp.sqrt(jnp.float32(dh))
    outs = []
    for h in range(n_heads):                           # static unroll over heads
        q = qkv_ref[:, :, h * dh:(h + 1) * dh]
        k = qkv_ref[:, :, D + h * dh:D + (h + 1) * dh]
        v = qkv_ref[:, :, 2 * D + h * dh:2 * D + (h + 1) * dh]
        s = jnp.einsum('nld,nmd->nlm', q, k,
                       preferred_element_type=jnp.float32) * scale
        s = s - jnp.max(s, axis=-1, keepdims=True)
        p = jnp.exp(s)
        inv = pl.reciprocal(jnp.sum(p, axis=-1, keepdims=True), approx=True)
        outs.append(jnp.einsum('nlm,nmd->nld', p * inv, v,
                               preferred_element_type=jnp.float32))
    # Single lane-dense store: last dim is d_model, not dh.
    o_ref[...] = jnp.concatenate(outs, axis=-1)


def attention(qkv, n_heads, d_model):
    """qkv: (N, L, 3*D); returns (N, L, D).  A block of several batch rows (and
    all heads) is handled per grid step to amortize launch overhead."""
    N, L, D3 = qkv.shape
    nb = N // 2 if (N % 2 == 0 and N >= 2) else N      # >=2 parallel blocks
    return pl.pallas_call(
        functools.partial(_attn_kernel, n_heads=n_heads, d_model=d_model),
        out_shape=jax.ShapeDtypeStruct((N, L, d_model), jnp.float32),
        grid=(N // nb,),
        in_specs=[pl.BlockSpec((nb, L, D3), lambda i: (i, 0, 0))],
        out_specs=pl.BlockSpec((nb, L, d_model), lambda i: (i, 0, 0)),
        compiler_params=pltpu.CompilerParams(
            dimension_semantics=("parallel",)),
    )(qkv)


# ----------------------------- plain-JAX glue -------------------------------

def rope_positional_encoding(positions, d_model, base=10000.0):
    """Matches RoPEPositionalEncoding: (1, S) -> (1, S, 2*d_model),
    interleaved [sin_0, cos_0, sin_1, cos_1, ...]."""
    i = jnp.arange(d_model, dtype=jnp.float32)
    theta = base ** (-2.0 * jnp.floor(i / 2.0) / d_model)          # (d_model,)
    angles = positions.astype(jnp.float32)[..., None] * theta      # (1, S, d_model)
    pe = jnp.stack([jnp.sin(angles), jnp.cos(angles)], axis=-1)    # (1, S, d_model, 2)
    return pe.reshape(positions.shape[0], positions.shape[1], 2 * d_model)


def non_uniform_interpolation(pos_embed, extension_ratio, lambda_factors,
                              n_hat, d_model):
    """LongRoPE-style per-frequency rescale: frequency j keeps its original scale
    for j < n_hat, otherwise both its sin/cos dims are scaled by
    1 / (lambda_j * extension_ratio)."""
    j = jnp.arange(d_model)
    scale_j = jnp.where(j < n_hat, 1.0, 1.0 / (lambda_factors * extension_ratio))
    scale = jnp.repeat(scale_j, 2)                                  # (2*d_model,)
    return pos_embed * scale


def init_params(key, d_model, n_heads, num_layers, vocab_size, dim_ff):
    keys = jax.random.split(key, 3 + num_layers)
    params = {
        "embedding": 0.02 * jax.random.normal(keys[0], (vocab_size, d_model),
                                              jnp.float32),
        "out_w": 0.02 * jax.random.normal(keys[1], (d_model, vocab_size),
                                          jnp.float32),
        "out_b": jnp.zeros((vocab_size,), jnp.float32),
        # synthetic, deterministic LongRoPE interpolation state ('4k' bucket)
        "lambda_4k": 1.0 + jnp.linspace(0.0, 1.0, d_model, dtype=jnp.float32),
        "n_hat_4k": d_model // 4,
        "extension_ratio": 2.0,
        "layers": [],
    }
    for l in range(num_layers):
        k = jax.random.split(keys[3 + l], 4)
        params["layers"].append(dict(
            in_proj_w=0.02 * jax.random.normal(k[0], (d_model, 3 * d_model),
                                               jnp.float32),
            in_proj_b=jnp.zeros((3 * d_model,), jnp.float32),
            out_proj_w=0.02 * jax.random.normal(k[1], (d_model, d_model),
                                                jnp.float32),
            out_proj_b=jnp.zeros((d_model,), jnp.float32),
            ln1_g=jnp.ones((d_model,), jnp.float32),
            ln1_b=jnp.zeros((d_model,), jnp.float32),
            w1=0.02 * jax.random.normal(k[2], (d_model, dim_ff), jnp.float32),
            b1=jnp.zeros((dim_ff,), jnp.float32),
            w2=0.02 * jax.random.normal(k[3], (dim_ff, d_model), jnp.float32),
            b2=jnp.zeros((d_model,), jnp.float32),
            ln2_g=jnp.ones((d_model,), jnp.float32),
            ln2_b=jnp.zeros((d_model,), jnp.float32),
        ))
    return params


def transformer_layer(p, x, n_heads):
    # x: (B, S, D).  PyTorch batch_first=False -> axis 0 is the sequence axis.
    L, N, D = x.shape
    x2 = x.reshape(L * N, D)

    qkv = linear(x2, p["in_proj_w"], p["in_proj_b"])                # (L*N, 3D)
    # One small transpose so the attention "batch" axis leads; heads stay
    # packed in the (lane-dense) last dim.
    qkv = qkv.reshape(L, N, 3 * D).transpose(1, 0, 2)               # (N, L, 3D)
    o = attention(qkv, n_heads, D)                                  # (N, L, D)
    o2 = o.transpose(1, 0, 2).reshape(L * N, D)                     # back to (L*N, D)

    # Fused: out_proj + bias + residual + LN1 + FFN(ReLU) + bias + residual + LN2
    y = attn_tail_ffn(o2, x2, p)
    return y.reshape(L, N, D)


def forward(params, input_ids, d_model, n_heads):
    B, S = input_ids.shape
    tok = params["embedding"][input_ids]                            # (B, S, D)
    positions = jnp.arange(S, dtype=jnp.int32)[None, :]             # (1, S)
    pe = rope_positional_encoding(positions, d_model)               # (1, S, 2D)
    pe = non_uniform_interpolation(pe, params["extension_ratio"],
                                   params["lambda_4k"], params["n_hat_4k"],
                                   d_model)
    pe = pe[:, :S, :d_model]                                        # (1, S, D)
    x = tok + pe                                                    # XLA fuses with gather
    for lp in params["layers"]:
        x = transformer_layer(lp, x, n_heads)
    logits = linear(x.reshape(B * S, d_model), params["out_w"], params["out_b"])
    return logits.reshape(B, S, -1)                                 # (B, S, vocab)


# ---------------------------------- main ------------------------------------

if __name__ == "__main__":
    d_model, n_heads, num_layers, vocab_size, max_len = 32, 4, 2, 64, 16
    dim_ff = 2048  # nn.TransformerEncoderLayer default dim_feedforward
    B, S = 2, 8

    key = jax.random.PRNGKey(0)
    pkey, dkey = jax.random.split(key)
    params = init_params(pkey, d_model, n_heads, num_layers, vocab_size, dim_ff)
    input_ids = jax.random.randint(dkey, (B, S), 0, vocab_size, dtype=jnp.int32)

    fwd = jax.jit(functools.partial(forward, d_model=d_model, n_heads=n_heads))
    logits = fwd(params, input_ids)
    jax.block_until_ready(logits)

    assert logits.shape == (B, S, vocab_size), logits.shape
    assert logits.dtype == jnp.float32
    print("KERNEL_OK")
</pallas_src>

<mosaic_0001>
module attributes {stable_mosaic.version = 11 : i64} {
  func.func @_linear_kernel(%arg0: i32, %arg1: i32, %arg2: memref<8x32xf32, #tpu.memory_space<vmem>>, %arg3: memref<32x96xf32, #tpu.memory_space<vmem>>, %arg4: memref<1x96xf32, #tpu.memory_space<vmem>>, %arg5: memref<8x96xf32, #tpu.memory_space<vmem>>) attributes {dimension_semantics = [#tpu.dimension_semantics<parallel>, #tpu.dimension_semantics<parallel>], iteration_bounds = array<i64: 2, 1>, scalar_prefetch = 0 : i64, scratch_operands = 0 : i64, tpu.core_type = #tpu.core_type<tc>, window_params = [{transform_indices = @transform_0, window_bounds = array<i64: 8, 32>}, {transform_indices = @transform_1, window_bounds = array<i64: 32, 96>}, {transform_indices = @transform_2, window_bounds = array<i64: 1, 96>}, {transform_indices = @transform_3, window_bounds = array<i64: 8, 96>}]} {
    %c0 = arith.constant 0 : index
    %c0_0 = arith.constant 0 : index
    %0 = vector.load %arg2[%c0, %c0_0] : memref<8x32xf32, #tpu.memory_space<vmem>>, vector<8x32xf32>
    %c0_1 = arith.constant 0 : index
    %c0_2 = arith.constant 0 : index
    %1 = vector.load %arg3[%c0_1, %c0_2] : memref<32x96xf32, #tpu.memory_space<vmem>>, vector<32x96xf32>
    %cst = arith.constant dense<0.000000e+00> : vector<8x96xf32>
    %2 = tpu.matmul %0, %1, %cst {dimension_numbers = #tpu.dot_dimension_numbers<[1], [0], [0], [1], [0, 0, 1, 1], [], []>} : vector<8x32xf32>, vector<32x96xf32>, vector<8x96xf32> -> vector<8x96xf32>
    %c0_3 = arith.constant 0 : index
    %c0_4 = arith.constant 0 : index
    %3 = vector.load %arg4[%c0_3, %c0_4] : memref<1x96xf32, #tpu.memory_space<vmem>>, vector<1x96xf32>
    %4 = vector.broadcast %3 : vector<1x96xf32> to vector<8x96xf32>
    %5 = arith.addf %2, %4 : vector<8x96xf32>
    %c0_5 = arith.constant 0 : index
    %c0_6 = arith.constant 0 : index
    %6 = vector.load %arg5[%c0_5, %c0_6] : memref<8x96xf32, #tpu.memory_space<vmem>>, vector<8x96xf32>
    tpu.vector_store %arg5[%c0_5, %c0_6], %5 {strides = array<i32>} : memref<8x96xf32, #tpu.memory_space<vmem>>, vector<8x96xf32>,
    return
  }
  func.func @transform_0(%arg0: i32, %arg1: i32) -> (i32, i32) {
    %c0_i32 = arith.constant 0 : i32
    %c0_i32_0 = arith.constant 0 : i32
    return %arg0, %c0_i32 : i32, i32
  }
  func.func @transform_1(%arg0: i32, %arg1: i32) -> (i32, i32) {
    %c0_i32 = arith.constant 0 : i32
    %c0_i32_0 = arith.constant 0 : i32
    return %c0_i32, %arg1 : i32, i32
  }
  func.func @transform_2(%arg0: i32, %arg1: i32) -> (i32, i32) {
    %c0_i32 = arith.constant 0 : i32
    %c0_i32_0 = arith.constant 0 : i32
    return %c0_i32, %arg1 : i32, i32
  }
  func.func @transform_3(%arg0: i32, %arg1: i32) -> (i32, i32) {
    %c0_i32 = arith.constant 0 : i32
    return %arg0, %arg1 : i32, i32
  }
}

module attributes {stable_mosaic.version = 11 : i64} {
  func.func @_attn_kernel(%arg0: i32, %arg1: memref<4x2x96xf32, #tpu.memory_space<vmem>>, %arg2: memref<4x2x32xf32, #tpu.memory_space<vmem>>) attributes {dimension_semantics = [#tpu.dimension_semantics<parallel>], iteration_bounds = array<i64: 2>, scalar_prefetch = 0 : i64, scratch_operands = 0 : i64, tpu.core_type = #tpu.core_type<tc>, window_params = [{transform_indices = @transform_0, window_bounds = array<i64: 4, 2, 96>}, {transform_indices = @transform_1, window_bounds = array<i64: 4, 2, 32>}]} {
    %cst = arith.constant 8.000000e+00 : f32
    %0 = math.sqrt %cst : f32
    %cst_0 = arith.constant 1.000000e+00 : f32
    %1 = arith.divf %cst_0, %0 : f32
    %c0 = arith.constant 0 : index
    %c0_1 = arith.constant 0 : index
    %c0_2 = arith.constant 0 : index
    %2 = vector.load %arg1[%c0, %c0_1, %c0_2] : memref<4x2x96xf32, #tpu.memory_space<vmem>>, vector<4x2x8xf32>
    %c0_3 = arith.constant 0 : index
    %c0_4 = arith.constant 0 : index
    %c32 = arith.constant 32 : index
    %3 = vector.load %arg1[%c0_3, %c0_4, %c32] : memref<4x2x96xf32, #tpu.memory_space<vmem>>, vector<4x2x8xf32>
    %c0_5 = arith.constant 0 : index
    %c0_6 = arith.constant 0 : index
    %c64 = arith.constant 64 : index
    %4 = vector.load %arg1[%c0_5, %c0_6, %c64] : memref<4x2x96xf32, #tpu.memory_space<vmem>>, vector<4x2x8xf32>
    "tpu.trace_start"() <{level = 10 : i32, message = "nld,nmd->nlm"}> : () -> ()
    %cst_7 = arith.constant dense<0.000000e+00> : vector<4x2x2xf32>
    %5 = tpu.matmul %2, %3, %cst_7 {dimension_numbers = #tpu.dot_dimension_numbers<[2], [2], [1], [1], [0, 0, 0, 1, 1, 1], [0], [0]>} : vector<4x2x8xf32>, vector<4x2x8xf32>, vector<4x2x2xf32> -> vector<4x2x2xf32>
    "tpu.trace_stop"() : () -> ()
    %6 = vector.broadcast %1 : f32 to vector<4x2x2xf32>
    %7 = arith.mulf %5, %6 : vector<4x2x2xf32>
    %cst_8 = arith.constant dense<0xFF800000> : vector<4x2xf32>
    %8 = vector.multi_reduction <maximumf>, %7, %cst_8 [2] : vector<4x2x2xf32> to vector<4x2xf32>
    %9 = vector.shape_cast %8 : vector<4x2xf32> to vector<4x2x1xf32>
    %10 = vector.broadcast %9 : vector<4x2x1xf32> to vector<4x2x2xf32>
    %11 = arith.subf %7, %10 : vector<4x2x2xf32>
    %12 = math.exp %11 : vector<4x2x2xf32>
    %cst_9 = arith.constant dense<0.000000e+00> : vector<4x2xf32>
    %13 = vector.multi_reduction <add>, %12, %cst_9 [2] : vector<4x2x2xf32> to vector<4x2xf32>
    %14 = vector.shape_cast %13 : vector<4x2xf32> to vector<4x2x1xf32>
    %15 = tpu.reciprocal %14 {approx = true} : vector<4x2x1xf32> -> vector<4x2x1xf32>
    %16 = vector.broadcast %15 : vector<4x2x1xf32> to vector<4x2x2xf32>
    %17 = arith.mulf %12, %16 : vector<4x2x2xf32>
    "tpu.trace_start"() <{level = 10 : i32, message = "nlm,nmd->nld"}> : () -> ()
    %cst_10 = arith.constant dense<0.000000e+00> : vector<4x2x8xf32>
    %18 = tpu.matmul %17, %4, %cst_10 {dimension_numbers = #tpu.dot_dimension_numbers<[2], [1], [1], [2], [0, 0, 0, 1, 1, 2], [0], [0]>} : vector<4x2x2xf32>, vector<4x2x8xf32>, vector<4x2x8xf32> -> vector<4x2x8xf32>
    "tpu.trace_stop"() : () -> ()
    %c0_11 = arith.constant 0 : index
    %c0_12 = arith.constant 0 : index
    %c8 = arith.constant 8 : index
    %19 = vector.load %arg1[%c0_11, %c0_12, %c8] : memref<4x2x96xf32, #tpu.memory_space<vmem>>, vector<4x2x8xf32>
    %c0_13 = arith.constant 0 : index
    %c0_14 = arith.constant 0 : index
    %c40 = arith.constant 40 : index
    %20 = vector.load %arg1[%c0_13, %c0_14, %c40] : memref<4x2x96xf32, #tpu.memory_space<vmem>>, vector<4x2x8xf32>
    %c0_15 = arith.constant 0 : index
    %c0_16 = arith.constant 0 : index
    %c72 = arith.constant 72 : index
    %21 = vector.load %arg1[%c0_15, %c0_16, %c72] : memref<4x2x96xf32, #tpu.memory_space<vmem>>, vector<4x2x8xf32>
    "tpu.trace_start"() <{level = 10 : i32, message = "nld,nmd->nlm"}> : () -> ()
    %cst_17 = arith.constant dense<0.000000e+00> : vector<4x2x2xf32>
    %22 = tpu.matmul %19, %20, %cst_17 {dimension_numbers = #tpu.dot_dimension_numbers<[2], [2], [1], [1], [0, 0, 0, 1, 1, 1], [0], [0]>} : vector<4x2x8xf32>, vector<4x2x8xf32>, vector<4x2x2xf32> -> vector<4x2x2xf32>
    "tpu.trace_stop"() : () -> ()
    %23 = vector.broadcast %1 : f32 to vector<4x2x2xf32>
    %24 = arith.mulf %22, %23 : vector<4x2x2xf32>
    %cst_18 = arith.constant dense<0xFF800000> : vector<4x2xf32>
    %25 = vector.multi_reduction <maximumf>, %24, %cst_18 [2] : vector<4x2x2xf32> to vector<4x2xf32>
    %26 = vector.shape_cast %25 : vector<4x2xf32> to vector<4x2x1xf32>
    %27 = vector.broadcast %26 : vector<4x2x1xf32> to vector<4x2x2xf32>
    %28 = arith.subf %24, %27 : vector<4x2x2xf32>
    %29 = math.exp %28 : vector<4x2x2xf32>
    %cst_19 = arith.constant dense<0.000000e+00> : vector<4x2xf32>
    %30 = vector.multi_reduction <add>, %29, %cst_19 [2] : vector<4x2x2xf32> to vector<4x2xf32>
    %31 = vector.shape_cast %30 : vector<4x2xf32> to vector<4x2x1xf32>
    %32 = tpu.reciprocal %31 {approx = true} : vector<4x2x1xf32> -> vector<4x2x1xf32>
    %33 = vector.broadcast %32 : vector<4x2x1xf32> to vector<4x2x2xf32>
    %34 = arith.mulf %29, %33 : vector<4x2x2xf32>
    "tpu.trace_start"() <{level = 10 : i32, message = "nlm,nmd->nld"}> : () -> ()
    %cst_20 = arith.constant dense<0.000000e+00> : vector<4x2x8xf32>
    %35 = tpu.matmul %34, %21, %cst_20 {dimension_numbers = #tpu.dot_dimension_numbers<[2], [1], [1], [2], [0, 0, 0, 1, 1, 2], [0], [0]>} : vector<4x2x2xf32>, vector<4x2x8xf32>, vector<4x2x8xf32> -> vector<4x2x8xf32>
    "tpu.trace_stop"() : () -> ()
    %c0_21 = arith.constant 0 : index
    %c0_22 = arith.constant 0 : index
    %c16 = arith.constant 16 : index
    %36 = vector.load %arg1[%c0_21, %c0_22, %c16] : memref<4x2x96xf32, #tpu.memory_space<vmem>>, vector<4x2x8xf32>
    %c0_23 = arith.constant 0 : index
    %c0_24 = arith.constant 0 : index
    %c48 = arith.constant 48 : index
    %37 = vector.load %arg1[%c0_23, %c0_24, %c48] : memref<4x2x96xf32, #tpu.memory_space<vmem>>, vector<4x2x8xf32>
    %c0_25 = arith.constant 0 : index
    %c0_26 = arith.constant 0 : index
    %c80 = arith.constant 80 : index
    %38 = vector.load %arg1[%c0_25, %c0_26, %c80] : memref<4x2x96xf32, #tpu.memory_space<vmem>>, vector<4x2x8xf32>
    "tpu.trace_start"() <{level = 10 : i32, message = "nld,nmd->nlm"}> : () -> ()
    %cst_27 = arith.constant dense<0.000000e+00> : vector<4x2x2xf32>
    %39 = tpu.matmul %36, %37, %cst_27 {dimension_numbers = #tpu.dot_dimension_numbers<[2], [2], [1], [1], [0, 0, 0, 1, 1, 1], [0], [0]>} : vector<4x2x8xf32>, vector<4x2x8xf32>, vector<4x2x2xf32> -> vector<4x2x2xf32>
    "tpu.trace_stop"() : () -> ()
    %40 = vector.broadcast %1 : f32 to vector<4x2x2xf32>
    %41 = arith.mulf %39, %40 : vector<4x2x2xf32>
    %cst_28 = arith.constant dense<0xFF800000> : vector<4x2xf32>
    %42 = vector.multi_reduction <maximumf>, %41, %cst_28 [2] : vector<4x2x2xf32> to vector<4x2xf32>
    %43 = vector.shape_cast %42 : vector<4x2xf32> to vector<4x2x1xf32>
    %44 = vector.broadcast %43 : vector<4x2x1xf32> to vector<4x2x2xf32>
    %45 = arith.subf %41, %44 : vector<4x2x2xf32>
    %46 = math.exp %45 : vector<4x2x2xf32>
    %cst_29 = arith.constant dense<0.000000e+00> : vector<4x2xf32>
    %47 = vector.multi_reduction <add>, %46, %cst_29 [2] : vector<4x2x2xf32> to vector<4x2xf32>
    %48 = vector.shape_cast %47 : vector<4x2xf32> to vector<4x2x1xf32>
    %49 = tpu.reciprocal %48 {approx = true} : vector<4x2x1xf32> -> vector<4x2x1xf32>
    %50 = vector.broadcast %49 : vector<4x2x1xf32> to vector<4x2x2xf32>
    %51 = arith.mulf %46, %50 : vector<4x2x2xf32>
    "tpu.trace_start"() <{level = 10 : i32, message = "nlm,nmd->nld"}> : () -> ()
    %cst_30 = arith.constant dense<0.000000e+00> : vector<4x2x8xf32>
    %52 = tpu.matmul %51, %38, %cst_30 {dimension_numbers = #tpu.dot_dimension_numbers<[2], [1], [1], [2], [0, 0, 0, 1, 1, 2], [0], [0]>} : vector<4x2x2xf32>, vector<4x2x8xf32>, vector<4x2x8xf32> -> vector<4x2x8xf32>
    "tpu.trace_stop"() : () -> ()
    %c0_31 = arith.constant 0 : index
    %c0_32 = arith.constant 0 : index
    %c24 = arith.constant 24 : index
    %53 = vector.load %arg1[%c0_31, %c0_32, %c24] : memref<4x2x96xf32, #tpu.memory_space<vmem>>, vector<4x2x8xf32>
    %c0_33 = arith.constant 0 : index
    %c0_34 = arith.constant 0 : index
    %c56 = arith.constant 56 : index
    %54 = vector.load %arg1[%c0_33, %c0_34, %c56] : memref<4x2x96xf32, #tpu.memory_space<vmem>>, vector<4x2x8xf32>
    %c0_35 = arith.constant 0 : index
    %c0_36 = arith.constant 0 : index
    %c88 = arith.constant 88 : index
    %55 = vector.load %arg1[%c0_35, %c0_36, %c88] : memref<4x2x96xf32, #tpu.memory_space<vmem>>, vector<4x2x8xf32>
    "tpu.trace_start"() <{level = 10 : i32, message = "nld,nmd->nlm"}> : () -> ()
    %cst_37 = arith.constant dense<0.000000e+00> : vector<4x2x2xf32>
    %56 = tpu.matmul %53, %54, %cst_37 {dimension_numbers = #tpu.dot_dimension_numbers<[2], [2], [1], [1], [0, 0, 0, 1, 1, 1], [0], [0]>} : vector<4x2x8xf32>, vector<4x2x8xf32>, vector<4x2x2xf32> -> vector<4x2x2xf32>
    "tpu.trace_stop"() : () -> ()
    %57 = vector.broadcast %1 : f32 to vector<4x2x2xf32>
    %58 = arith.mulf %56, %57 : vector<4x2x2xf32>
    %cst_38 = arith.constant dense<0xFF800000> : vector<4x2xf32>
    %59 = vector.multi_reduction <maximumf>, %58, %cst_38 [2] : vector<4x2x2xf32> to vector<4x2xf32>
    %60 = vector.shape_cast %59 : vector<4x2xf32> to vector<4x2x1xf32>
    %61 = vector.broadcast %60 : vector<4x2x1xf32> to vector<4x2x2xf32>
    %62 = arith.subf %58, %61 : vector<4x2x2xf32>
    %63 = math.exp %62 : vector<4x2x2xf32>
    %cst_39 = arith.constant dense<0.000000e+00> : vector<4x2xf32>
    %64 = vector.multi_reduction <add>, %63, %cst_39 [2] : vector<4x2x2xf32> to vector<4x2xf32>
    %65 = vector.shape_cast %64 : vector<4x2xf32> to vector<4x2x1xf32>
    %66 = tpu.reciprocal %65 {approx = true} : vector<4x2x1xf32> -> vector<4x2x1xf32>
    %67 = vector.broadcast %66 : vector<4x2x1xf32> to vector<4x2x2xf32>
    %68 = arith.mulf %63, %67 : vector<4x2x2xf32>
    "tpu.trace_start"() <{level = 10 : i32, message = "nlm,nmd->nld"}> : () -> ()
    %cst_40 = arith.constant dense<0.000000e+00> : vector<4x2x8xf32>
    %69 = tpu.matmul %68, %55, %cst_40 {dimension_numbers = #tpu.dot_dimension_numbers<[2], [1], [1], [2], [0, 0, 0, 1, 1, 2], [0], [0]>} : vector<4x2x2xf32>, vector<4x2x8xf32>, vector<4x2x8xf32> -> vector<4x2x8xf32>
    "tpu.trace_stop"() : () -> ()
    %70 = tpu.concatenate %18, %35, %52, %69 in 2 : vector<4x2x8xf32>, vector<4x2x8xf32>, vector<4x2x8xf32>, vector<4x2x8xf32> -> vector<4x2x32xf32>
    %c0_41 = arith.constant 0 : index
    %c0_42 = arith.constant 0 : index
    %c0_43 = arith.constant 0 : index
    %71 = vector.load %arg2[%c0_41, %c0_42, %c0_43] : memref<4x2x32xf32, #tpu.memory_space<vmem>>, vector<4x2x32xf32>
    tpu.vector_store %arg2[%c0_41, %c0_42, %c0_43], %70 {strides = array<i32>} : memref<4x2x32xf32, #tpu.memory_space<vmem>>, vector<4x2x32xf32>,
    return
  }
  func.func @transform_0(%arg0: i32) -> (i32, i32, i32) {
    %c0_i32 = arith.constant 0 : i32
    %c0_i32_0 = arith.constant 0 : i32
    %c0_i32_1 = arith.constant 0 : i32
    return %arg0, %c0_i32, %c0_i32_0 : i32, i32, i32
  }
  func.func @transform_1(%arg0: i32) -> (i32, i32, i32) {
    %c0_i32 = arith.constant 0 : i32
    %c0_i32_0 = arith.constant 0 : i32
    %c0_i32_1 = arith.constant 0 : i32
    return %arg0, %c0_i32, %c0_i32_0 : i32, i32, i32
  }
}

module attributes {stable_mosaic.version = 11 : i64} {
  func.func @_attn_tail_ffn_kernel(%arg0: i32, %arg1: memref<8x32xf32, #tpu.memory_space<vmem>>, %arg2: memref<8x32xf32, #tpu.memory_space<vmem>>, %arg3: memref<32x32xf32, #tpu.memory_space<vmem>>, %arg4: memref<1x32xf32, #tpu.memory_space<vmem>>, %arg5: memref<1x32xf32, #tpu.memory_space<vmem>>, %arg6: memref<1x32xf32, #tpu.memory_space<vmem>>, %arg7: memref<32x2048xf32, #tpu.memory_space<vmem>>, %arg8: memref<1x2048xf32, #tpu.memory_space<vmem>>, %arg9: memref<2048x32xf32, #tpu.memory_space<vmem>>, %arg10: memref<1x32xf32, #tpu.memory_space<vmem>>, %arg11: memref<1x32xf32, #tpu.memory_space<vmem>>, %arg12: memref<1x32xf32, #tpu.memory_space<vmem>>, %arg13: memref<8x32xf32, #tpu.memory_space<vmem>>) attributes {dimension_semantics = [#tpu.dimension_semantics<parallel>], iteration_bounds = array<i64: 2>, scalar_prefetch = 0 : i64, scratch_operands = 0 : i64, tpu.core_type = #tpu.core_type<tc>, window_params = [{transform_indices = @transform_0, window_bounds = array<i64: 8, 32>}, {transform_indices = @transform_1, window_bounds = array<i64: 8, 32>}, {pipeline_mode = #tpu.pipeline_mode<synchronous>, transform_indices = @transform_2, window_bounds = array<i64: 32, 32>}, {pipeline_mode = #tpu.pipeline_mode<synchronous>, transform_indices = @transform_3, window_bounds = array<i64: 1, 32>}, {pipeline_mode = #tpu.pipeline_mode<synchronous>, transform_indices = @transform_4, window_bounds = array<i64: 1, 32>}, {pipeline_mode = #tpu.pipeline_mode<synchronous>, transform_indices = @transform_5, window_bounds = array<i64: 1, 32>}, {pipeline_mode = #tpu.pipeline_mode<synchronous>, transform_indices = @transform_6, window_bounds = array<i64: 32, 2048>}, {pipeline_mode = #tpu.pipeline_mode<synchronous>, transform_indices = @transform_7, window_bounds = array<i64: 1, 2048>}, {pipeline_mode = #tpu.pipeline_mode<synchronous>, transform_indices = @transform_8, window_bounds = array<i64: 2048, 32>}, {pipeline_mode = #tpu.pipeline_mode<synchronous>, transform_indices = @transform_9, window_bounds = array<i64: 1, 32>}, {pipeline_mode = #tpu.pipeline_mode<synchronous>, transform_indices = @transform_10, window_bounds = array<i64: 1, 32>}, {pipeline_mode = #tpu.pipeline_mode<synchronous>, transform_indices = @transform_11, window_bounds = array<i64: 1, 32>}, {transform_indices = @transform_12, window_bounds = array<i64: 8, 32>}]} {
    %c0 = arith.constant 0 : index
    %c0_0 = arith.constant 0 : index
    %0 = vector.load %arg1[%c0, %c0_0] : memref<8x32xf32, #tpu.memory_space<vmem>>, vector<8x32xf32>
    %c0_1 = arith.constant 0 : index
    %c0_2 = arith.constant 0 : index
    %1 = vector.load %arg3[%c0_1, %c0_2] : memref<32x32xf32, #tpu.memory_space<vmem>>, vector<32x32xf32>
    %cst = arith.constant dense<0.000000e+00> : vector<8x32xf32>
    %2 = tpu.matmul %0, %1, %cst {dimension_numbers = #tpu.dot_dimension_numbers<[1], [0], [0], [1], [0, 0, 1, 1], [], []>} : vector<8x32xf32>, vector<32x32xf32>, vector<8x32xf32> -> vector<8x32xf32>
    %c0_3 = arith.constant 0 : index
    %c0_4 = arith.constant 0 : index
    %3 = vector.load %arg4[%c0_3, %c0_4] : memref<1x32xf32, #tpu.memory_space<vmem>>, vector<1x32xf32>
    %4 = vector.broadcast %3 : vector<1x32xf32> to vector<8x32xf32>
    %5 = arith.addf %2, %4 : vector<8x32xf32>
    %c0_5 = arith.constant 0 : index
    %c0_6 = arith.constant 0 : index
    %6 = vector.load %arg2[%c0_5, %c0_6] : memref<8x32xf32, #tpu.memory_space<vmem>>, vector<8x32xf32>
    %7 = arith.addf %5, %6 : vector<8x32xf32>
    %c0_7 = arith.constant 0 : index
    %c0_8 = arith.constant 0 : index
    %8 = vector.load %arg5[%c0_7, %c0_8] : memref<1x32xf32, #tpu.memory_space<vmem>>, vector<1x32xf32>
    %c0_9 = arith.constant 0 : index
    %c0_10 = arith.constant 0 : index
    %9 = vector.load %arg6[%c0_9, %c0_10] : memref<1x32xf32, #tpu.memory_space<vmem>>, vector<1x32xf32>
    %cst_11 = arith.constant dense<0.000000e+00> : vector<8xf32>
    %10 = vector.multi_reduction <add>, %7, %cst_11 [1] : vector<8x32xf32> to vector<8xf32>
    %11 = vector.shape_cast %10 : vector<8xf32> to vector<8x1xf32>
    %cst_12 = arith.constant 3.200000e+01 : f32
    %12 = vector.broadcast %cst_12 : f32 to vector<8x1xf32>
    %13 = arith.divf %11, %12 : vector<8x1xf32>
    %14 = vector.broadcast %13 : vector<8x1xf32> to vector<8x32xf32>
    %15 = arith.subf %7, %14 : vector<8x32xf32>
    %16 = arith.mulf %15, %15 : vector<8x32xf32>
    %cst_13 = arith.constant dense<0.000000e+00> : vector<8xf32>
    %17 = vector.multi_reduction <add>, %16, %cst_13 [1] : vector<8x32xf32> to vector<8xf32>
    %18 = vector.shape_cast %17 : vector<8xf32> to vector<8x1xf32>
    %cst_14 = arith.constant 3.200000e+01 : f32
    %19 = vector.broadcast %cst_14 : f32 to vector<8x1xf32>
    %20 = arith.divf %18, %19 : vector<8x1xf32>
    %21 = vector.broadcast %13 : vector<8x1xf32> to vector<8x32xf32>
    %22 = arith.subf %7, %21 : vector<8x32xf32>
    %cst_15 = arith.constant 9.99999974E-6 : f32
    %23 = vector.broadcast %cst_15 : f32 to vector<8x1xf32>
    %24 = arith.addf %20, %23 : vector<8x1xf32>
    %25 = math.rsqrt %24 : vector<8x1xf32>
    %26 = vector.broadcast %25 : vector<8x1xf32> to vector<8x32xf32>
    %27 = arith.mulf %22, %26 : vector<8x32xf32>
    %28 = vector.broadcast %8 : vector<1x32xf32> to vector<8x32xf32>
    %29 = arith.mulf %27, %28 : vector<8x32xf32>
    %30 = vector.broadcast %9 : vector<1x32xf32> to vector<8x32xf32>
    %31 = arith.addf %29, %30 : vector<8x32xf32>
    %c0_16 = arith.constant 0 : index
    %c0_17 = arith.constant 0 : index
    %32 = vector.load %arg7[%c0_16, %c0_17] : memref<32x2048xf32, #tpu.memory_space<vmem>>, vector<32x2048xf32>
    %cst_18 = arith.constant dense<0.000000e+00> : vector<8x2048xf32>
    %33 = tpu.matmul %31, %32, %cst_18 {dimension_numbers = #tpu.dot_dimension_numbers<[1], [0], [0], [1], [0, 0, 1, 1], [], []>} : vector<8x32xf32>, vector<32x2048xf32>, vector<8x2048xf32> -> vector<8x2048xf32>
    %c0_19 = arith.constant 0 : index
    %c0_20 = arith.constant 0 : index
    %34 = vector.load %arg8[%c0_19, %c0_20] : memref<1x2048xf32, #tpu.memory_space<vmem>>, vector<1x2048xf32>
    %35 = vector.broadcast %34 : vector<1x2048xf32> to vector<8x2048xf32>
    %36 = arith.addf %33, %35 : vector<8x2048xf32>
    %cst_21 = arith.constant 0.000000e+00 : f32
    %37 = vector.broadcast %cst_21 : f32 to vector<8x2048xf32>
    %38 = arith.maximumf %36, %37 : vector<8x2048xf32>
    %c0_22 = arith.constant 0 : index
    %c0_23 = arith.constant 0 : index
    %39 = vector.load %arg9[%c0_22, %c0_23] : memref<2048x32xf32, #tpu.memory_space<vmem>>, vector<2048x32xf32>
    %cst_24 = arith.constant dense<0.000000e+00> : vector<8x32xf32>
    %40 = tpu.matmul %38, %39, %cst_24 {dimension_numbers = #tpu.dot_dimension_numbers<[1], [0], [0], [1], [0, 0, 1, 1], [], []>} : vector<8x2048xf32>, vector<2048x32xf32>, vector<8x32xf32> -> vector<8x32xf32>
    %c0_25 = arith.constant 0 : index
    %c0_26 = arith.constant 0 : index
    %41 = vector.load %arg10[%c0_25, %c0_26] : memref<1x32xf32, #tpu.memory_space<vmem>>, vector<1x32xf32>
    %42 = vector.broadcast %41 : vector<1x32xf32> to vector<8x32xf32>
    %43 = arith.addf %40, %42 : vector<8x32xf32>
    %44 = arith.addf %43, %31 : vector<8x32xf32>
    %c0_27 = arith.constant 0 : index
    %c0_28 = arith.constant 0 : index
    %45 = vector.load %arg11[%c0_27, %c0_28] : memref<1x32xf32, #tpu.memory_space<vmem>>, vector<1x32xf32>
    %c0_29 = arith.constant 0 : index
    %c0_30 = arith.constant 0 : index
    %46 = vector.load %arg12[%c0_29, %c0_30] : memref<1x32xf32, #tpu.memory_space<vmem>>, vector<1x32xf32>
    %cst_31 = arith.constant dense<0.000000e+00> : vector<8xf32>
    %47 = vector.multi_reduction <add>, %44, %cst_31 [1] : vector<8x32xf32> to vector<8xf32>
    %48 = vector.shape_cast %47 : vector<8xf32> to vector<8x1xf32>
    %cst_32 = arith.constant 3.200000e+01 : f32
    %49 = vector.broadcast %cst_32 : f32 to vector<8x1xf32>
    %50 = arith.divf %48, %49 : vector<8x1xf32>
    %51 = vector.broadcast %50 : vector<8x1xf32> to vector<8x32xf32>
    %52 = arith.subf %44, %51 : vector<8x32xf32>
    %53 = arith.mulf %52, %52 : vector<8x32xf32>
    %cst_33 = arith.constant dense<0.000000e+00> : vector<8xf32>
    %54 = vector.multi_reduction <add>, %53, %cst_33 [1] : vector<8x32xf32> to vector<8xf32>
    %55 = vector.shape_cast %54 : vector<8xf32> to vector<8x1xf32>
    %cst_34 = arith.constant 3.200000e+01 : f32
    %56 = vector.broadcast %cst_34 : f32 to vector<8x1xf32>
    %57 = arith.divf %55, %56 : vector<8x1xf32>
    %58 = vector.broadcast %50 : vector<8x1xf32> to vector<8x32xf32>
    %59 = arith.subf %44, %58 : vector<8x32xf32>
    %cst_35 = arith.constant 9.99999974E-6 : f32
    %60 = vector.broadcast %cst_35 : f32 to vector<8x1xf32>
    %61 = arith.addf %57, %60 : vector<8x1xf32>
    %62 = math.rsqrt %61 : vector<8x1xf32>
    %63 = vector.broadcast %62 : vector<8x1xf32> to vector<8x32xf32>
    %64 = arith.mulf %59, %63 : vector<8x32xf32>
    %65 = vector.broadcast %45 : vector<1x32xf32> to vector<8x32xf32>
    %66 = arith.mulf %64, %65 : vector<8x32xf32>
    %67 = vector.broadcast %46 : vector<1x32xf32> to vector<8x32xf32>
    %68 = arith.addf %66, %67 : vector<8x32xf32>
    %c0_36 = arith.constant 0 : index
    %c0_37 = arith.constant 0 : index
    %69 = vector.load %arg13[%c0_36, %c0_37] : memref<8x32xf32, #tpu.memory_space<vmem>>, vector<8x32xf32>
    tpu.vector_store %arg13[%c0_36, %c0_37], %68 {strides = array<i32>} : memref<8x32xf32, #tpu.memory_space<vmem>>, vector<8x32xf32>,
    return
  }
  func.func @transform_0(%arg0: i32) -> (i32, i32) {
    %c0_i32 = arith.constant 0 : i32
    %c0_i32_0 = arith.constant 0 : i32
    return %arg0, %c0_i32 : i32, i32
  }
  func.func @transform_1(%arg0: i32) -> (i32, i32) {
    %c0_i32 = arith.constant 0 : i32
    %c0_i32_0 = arith.constant 0 : i32
    return %arg0, %c0_i32 : i32, i32
  }
  func.func @transform_2(%arg0: i32) -> (i32, i32) {
    %c0_i32 = arith.constant 0 : i32
    %c0_i32_0 = arith.constant 0 : i32
    %c0_i32_1 = arith.constant 0 : i32
    return %c0_i32, %c0_i32_0 : i32, i32
  }
  func.func @transform_3(%arg0: i32) -> (i32, i32) {
    %c0_i32 = arith.constant 0 : i32
    %c0_i32_0 = arith.constant 0 : i32
    %c0_i32_1 = arith.constant 0 : i32
    return %c0_i32, %c0_i32_0 : i32, i32
  }
  func.func @transform_4(%arg0: i32) -> (i32, i32) {
    %c0_i32 = arith.constant 0 : i32
    %c0_i32_0 = arith.constant 0 : i32
    %c0_i32_1 = arith.constant 0 : i32
    return %c0_i32, %c0_i32_0 : i32, i32
  }
  func.func @transform_5(%arg0: i32) -> (i32, i32) {
    %c0_i32 = arith.constant 0 : i32
    %c0_i32_0 = arith.constant 0 : i32
    %c0_i32_1 = arith.constant 0 : i32
    return %c0_i32, %c0_i32_0 : i32, i32
  }
  func.func @transform_6(%arg0: i32) -> (i32, i32) {
    %c0_i32 = arith.constant 0 : i32
    %c0_i32_0 = arith.constant 0 : i32
    %c0_i32_1 = arith.constant 0 : i32
    return %c0_i32, %c0_i32_0 : i32, i32
  }
  func.func @transform_7(%arg0: i32) -> (i32, i32) {
    %c0_i32 = arith.constant 0 : i32
    %c0_i32_0 = arith.constant 0 : i32
    %c0_i32_1 = arith.constant 0 : i32
    return %c0_i32, %c0_i32_0 : i32, i32
  }
  func.func @transform_8(%arg0: i32) -> (i32, i32) {
    %c0_i32 = arith.constant 0 : i32
    %c0_i32_0 = arith.constant 0 : i32
    %c0_i32_1 = arith.constant 0 : i32
    return %c0_i32, %c0_i32_0 : i32, i32
  }
  func.func @transform_9(%arg0: i32) -> (i32, i32) {
    %c0_i32 = arith.constant 0 : i32
    %c0_i32_0 = arith.constant 0 : i32
    %c0_i32_1 = arith.constant 0 : i32
    return %c0_i32, %c0_i32_0 : i32, i32
  }
  func.func @transform_10(%arg0: i32) -> (i32, i32) {
    %c0_i32 = arith.constant 0 : i32
    %c0_i32_0 = arith.constant 0 : i32
    %c0_i32_1 = arith.constant 0 : i32
    return %c0_i32, %c0_i32_0 : i32, i32
  }
  func.func @transform_11(%arg0: i32) -> (i32, i32) {
    %c0_i32 = arith.constant 0 : i32
    %c0_i32_0 = arith.constant 0 : i32
    %c0_i32_1 = arith.constant 0 : i32
    return %c0_i32, %c0_i32_0 : i32, i32
  }
  func.func @transform_12(%arg0: i32) -> (i32, i32) {
    %c0_i32 = arith.constant 0 : i32
    %c0_i32_0 = arith.constant 0 : i32
    return %arg0, %c0_i32 : i32, i32
  }
}

module attributes {stable_mosaic.version = 11 : i64} {
  func.func @_linear_kernel(%arg0: i32, %arg1: i32, %arg2: memref<8x32xf32, #tpu.memory_space<vmem>>, %arg3: memref<32x64xf32, #tpu.memory_space<vmem>>, %arg4: memref<1x64xf32, #tpu.memory_space<vmem>>, %arg5: memref<8x64xf32, #tpu.memory_space<vmem>>) attributes {dimension_semantics = [#tpu.dimension_semantics<parallel>, #tpu.dimension_semantics<parallel>], iteration_bounds = array<i64: 2, 1>, scalar_prefetch = 0 : i64, scratch_operands = 0 : i64, tpu.core_type = #tpu.core_type<tc>, window_params = [{transform_indices = @transform_0, window_bounds = array<i64: 8, 32>}, {transform_indices = @transform_1, window_bounds = array<i64: 32, 64>}, {transform_indices = @transform_2, window_bounds = array<i64: 1, 64>}, {transform_indices = @transform_3, window_bounds = array<i64: 8, 64>}]} {
    %c0 = arith.constant 0 : index
    %c0_0 = arith.constant 0 : index
    %0 = vector.load %arg2[%c0, %c0_0] : memref<8x32xf32, #tpu.memory_space<vmem>>, vector<8x32xf32>
    %c0_1 = arith.constant 0 : index
    %c0_2 = arith.constant 0 : index
    %1 = vector.load %arg3[%c0_1, %c0_2] : memref<32x64xf32, #tpu.memory_space<vmem>>, vector<32x64xf32>
    %cst = arith.constant dense<0.000000e+00> : vector<8x64xf32>
    %2 = tpu.matmul %0, %1, %cst {dimension_numbers = #tpu.dot_dimension_numbers<[1], [0], [0], [1], [0, 0, 1, 1], [], []>} : vector<8x32xf32>, vector<32x64xf32>, vector<8x64xf32> -> vector<8x64xf32>
    %c0_3 = arith.constant 0 : index
    %c0_4 = arith.constant 0 : index
    %3 = vector.load %arg4[%c0_3, %c0_4] : memref<1x64xf32, #tpu.memory_space<vmem>>, vector<1x64xf32>
    %4 = vector.broadcast %3 : vector<1x64xf32> to vector<8x64xf32>
    %5 = arith.addf %2, %4 : vector<8x64xf32>
    %c0_5 = arith.constant 0 : index
    %c0_6 = arith.constant 0 : index
    %6 = vector.load %arg5[%c0_5, %c0_6] : memref<8x64xf32, #tpu.memory_space<vmem>>, vector<8x64xf32>
    tpu.vector_store %arg5[%c0_5, %c0_6], %5 {strides = array<i32>} : memref<8x64xf32, #tpu.memory_space<vmem>>, vector<8x64xf32>,
    return
  }
  func.func @transform_0(%arg0: i32, %arg1: i32) -> (i32, i32) {
    %c0_i32 = arith.constant 0 : i32
    %c0_i32_0 = arith.constant 0 : i32
    return %arg0, %c0_i32 : i32, i32
  }
  func.func @transform_1(%arg0: i32, %arg1: i32) -> (i32, i32) {
    %c0_i32 = arith.constant 0 : i32
    %c0_i32_0 = arith.constant 0 : i32
    return %c0_i32, %arg1 : i32, i32
  }
  func.func @transform_2(%arg0: i32, %arg1: i32) -> (i32, i32) {
    %c0_i32 = arith.constant 0 : i32
    %c0_i32_0 = arith.constant 0 : i32
    return %c0_i32, %arg1 : i32, i32
  }
  func.func @transform_3(%arg0: i32, %arg1: i32) -> (i32, i32) {
    %c0_i32 = arith.constant 0 : i32
    return %arg0, %arg1 : i32, i32
  }
}

</mosaic_0001>

<bundles_post_ra>
// kernel: forward.7
= control target key start
LH: loop header
LB: loop body
LE: loop exit
PB: predicated region body
PF: predicated region fallthrough
CT: control target
= control target key end

     0   :  { %s432_s12 = smov 0   ;;  %s434_s13 = smov 0   ;;  %s477_s0 = inlined_call_operand.vmem [shape: f32[16,32], index: 0, kind: input, shape index: {}]   ;;  %s478_s1 = inlined_call_operand.vmem [shape: f32[32,96], index: 1, kind: input, shape index: {}]   ;;  %s479_s2 = inlined_call_operand.vmem [shape: f32[1,96], index: 2, kind: input, shape index: {}]   ;;  %s480_s3 = inlined_call_operand.vmem [shape: f32[16,96], index: 3, kind: output, shape index: {}]  }
   0x1   :  { %s436_s14 = smov 0  }
   0x2 LB: > { %s25_s15 = sadd.s32 1, %s406_s13  ;;  %p357_p0 = scmp.ge.s32.totalorder %s410_s14, 1  ;;  %s410_s14 = sphi %s436_s14, %s13_s14   ;;  %s406_s13 = sphi %s434_s13, %s482_s13   ;;  %s402_s12 = sphi %s432_s12, %s481_s12  }
   0x3   : > { %p27_p1 = scmp.ge.s32.totalorder %s25_s15, 2  ;;  %p167_p2 = scmp.lt.s32.totalorder %s410_s14, 3 }
   0x5   : > { %s484_s15 = smov (%p27_p1, %s25_s15), 0  ;;  %p168_p3 = pnand %p357_p0, %p167_p2 }
   0x6   : > { %p199_p4 = scmp.lt.s32.totalorder (!%p168_p3), %s402_s12, 1 }
   0x7   : > { %171 = sbr.rel (%p168_p3) target bundleno = 149 (0x95), region = 32 }
   0xc   : > { %v221_v0 = vld [vmem:[%s478_s1 + $0x18] sm:$0xff]  ;;  %v220_v1 = vld [vmem:[%s478_s1 + $0x10] sm:$0xff]  ;;  %v219_v2 = vld [vmem:[%s478_s1 + $0x8] sm:$0xff]  ;;  %s486_s12 = smov (!%p199_p4, %s402_s12), 1  ;;  %vm226_vm0 = vcmask 261120   ;;  %vm250_vm1 = vcmask 785408  }
   0xd   : > { %242 = vmatpush.msra.mxu0 %v221_v0  ;;  %v218_v3 = vld [vmem:[%s478_s1] sm:$0xff]  ;;  %s358_s24 = sshll.u32 %s486_s12, 3 }
   0xe   : > { %s202_s27 = scalar_lea.vmem %s477_s0, %s358_s24  ;;  %v387_v5 = vld [vmem:[%s479_s2] ss:$0 sm:$0xff]  ;;  %s216_s5 = scalar_lea.vmem %s480_s3, %s358_s24 }
   0xf   : > { %243 = vmatpush.msra.mxu0 %v220_v1  ;;  %v217_v4 = vld [vmem:[%s202_s27] sm:$0xff] }
  0x11   : > { %244 = vmatpush.msra.mxu0 %v219_v2 }
  0x13   : > { %245 = vmatpush.msra.mxu0 %v218_v3 }
  0x14   : > { %360 = vmatmul.msk.f32.vlgmr.msra.gmra.mxu0 %vm226_vm0, %v217_v4 }
  0x91   : > { %v247_v6 = vpop.f32.mrf.mxu0 }
  0x92   : > { %v248_v7 = vadd.f32 %v387_v5, %v247_v6 }
  0x94   : > { %251 = vst.msk [vmem:[%s216_s5] sm:$0xff] %vm250_vm1, %v248_v7 }
  0x95 PF: > { %s13_s14 = sadd.s32 1, %s410_s14   ;;  %s481_s12 = smov %s406_s13 }
  0x96   : > { %p10_p5 = scmp.ge.s32.totalorder %s13_s14, 4   ;;  %s482_s13 = smov %s484_s15 }
  0x98   :  { %12 = sbr.rel (!%p10_p5) target bundleno = 2 (0x2), region = 68 }

// kernel: forward.8
= control target key start
LH: loop header
LB: loop body
LE: loop exit
PB: predicated region body
PF: predicated region fallthrough
CT: control target
= control target key end

     0   :  { %s1536_s6 = smov 0   ;;  %s1810_s0 = inlined_call_operand.vmem [shape: f32[8,2,96], index: 0, kind: input, shape index: {}]   ;;  %s1811_s1 = inlined_call_operand.vmem [shape: f32[8,2,32], index: 1, kind: output, shape index: {}]  }
   0x1 LB: > { %s1343_s7 = sadd.s32 4294967295, %s1510_s6   ;;  %p1347_p0 = scmp.ge.s32.totalorder %s1510_s6, 1  ;;  %s1510_s6 = sphi %s1536_s6, %s11_s6  }
   0x2   : > { %p88_p1 = scmp.lt.s32.totalorder %s1510_s6, 3 }
   0x4   : > { %p89_p2 = pnand %p1347_p0, %p88_p1 }
   0x5   : > { %s1348_s8 = sshll.u32 (!%p89_p2), %s1343_s7, 2  ;;  %s1512_s13 = smov (!%p89_p2), 96  }
   0x6   : > { %92 = sbr.rel (%p89_p2) target bundleno = 2096 (0x830), region = 24  ;;  %p109_p3 = scmp.lt.s32.totalorder (!%p89_p2), %s1348_s8, 7 }
   0x7   : > { %s1513_s14 = smov (!%p89_p2), 64   ;;  %s1514_s15 = smov (!%p89_p2), 120  }
   0x8   : > { %s1515_s16 = smov (!%p89_p2), 88   ;;  %s1516_s17 = smov (!%p89_p2), 56  }
   0x9   : > { %s1517_s18 = smov (!%p89_p2), 112   ;;  %s1518_s19 = smov (!%p89_p2), 80  }
   0xa   : > { %s1519_s20 = smov (!%p89_p2), 72   ;;  %s1520_s21 = smov (!%p89_p2), 48  }
   0xb   : > { %s1813_s8 = smov (!%p109_p3, %s1348_s8), 7  ;;  %vm127_vm0 = vcmask 64512   ;;  %vm288_vm1 = vcmask 1041408   ;;  %vm237_vm2 = vcmask 9216   ;;  %vm284_vm3 = vcmask 15360   ;;  %s1521_s22 = smov 104  }
   0xc   : > { %s1349_s9 = sshll.u32 %s1813_s8, 1  ;;  %s1522_s23 = smov 40   ;;  %vm1272_vm4 = vcmask 130048   ;;  %vm1282_vm5 = vcmask 254976   ;;  %vm1277_vm6 = vcmask 195584  }
   0xd   : > { %s1552_s12 = scalar_lea.vmem %s1810_s0, %s1349_s9  ;;  %s1523_s24 = smov 8  }
   0xe   : > { %v122_v0 = vld [vmem:[%s1552_s12 + $0x4] sm:$0x3]  ;;  %v120_v1 = vld [vmem:[%s1552_s12] sm:$0x3]  ;;  %v123_v2 = vld [vmem:[%s1552_s12 + $0x6] sm:$0x3]  ;;  %s118_s29 = scalar_lea.vmem %s1811_s1, %s1349_s9 }
   0xf   : > { %180 = vrot.lane.b32.xlu0 %v122_v0, %s1512_s13  ;;  %125 = vrot.lane.b32.xlu1 %v120_v1, %s1512_s13  ;;  %v121_v3 = vld [vmem:[%s1552_s12 + $0x2] sm:$0x3]  ;;  %v1561_v4 = vld [vmem:[%s1552_s12 + $0x4] sm:$0x3]  ;;  %s1524_s25 = smov 16   ;;  %s1525_s26 = smov 24  }
  0x10   : > { %338 = vrot.lane.b32.xlu2 %v122_v0, %s1513_s14  ;;  %v1564_v5 = vld [vmem:[%s1552_s12 + $0x6] sm:$0x3]  ;;  %v1590_v25 = vld [vmem:[%s1552_s12] sm:$0x3]  ;;  %v1595_v29 = vld [vmem:[%s1552_s12 + $0x2] sm:$0x3] }
  0x17   : > { %207 = vrot.lane.b32.xlu0 %v123_v2, %s1512_s13  ;;  %153 = vrot.lane.b32.xlu1 %v121_v3, %s1512_s13 }
  0x18   : > { %365 = vrot.lane.b32.xlu2 %v123_v2, %s1513_s14 }
  0x1f   : > { %486 = vrot.lane.b32.xlu1 %v1564_v5, %s1515_s16 }
  0x20   : > { %455 = vrot.lane.b32.xlu2 %v1561_v4, %s1514_s15 }
  0x6a   : > { %v339_v10 = vpop.permute.xlu2 %338 }
  0x72   : > { %v366_v11 = vpop.permute.xlu2 %365 }
  0x7a   : > { %v456_v26 = vpop.permute.xlu2 %455 }
  0x81   : > { %v181_v6 = vpop.permute.xlu0 %180  ;;  %v126_v7 = vpop.permute.xlu1 %125 }
  0x82   : > { %1352 = vmatpush.xpose.msk.msra.mxu0 %vm127_vm0, %v126_v7  ;;  %1356 = vmatpush.xpose.msk.msra.mxu2 %vm127_vm0, %v181_v6 }
  0x85   : > { %1353 = vmatmul.msk.f32.vlgmr.msra.gmra.mxu0 %vm127_vm0, %v120_v1  ;;  %1357 = vmatmul.msk.f32.vlgmr.msra.gmra.mxu2 %vm127_vm0, %v122_v0 }
  0x86   : > { %1364 = vmatpush.msk.msrb.mxu2 %vm288_vm1, %v339_v10 }
  0x89   : > { %v208_v8 = vpop.permute.xlu0 %207  ;;  %v154_v9 = vpop.permute.xlu1 %153 }
  0x8a   : > { %1354 = vmatpush.xpose.msk.msra.mxu1 %vm127_vm0, %v154_v9  ;;  %1358 = vmatpush.xpose.msk.msra.mxu3 %vm127_vm0, %v208_v8 }
  0x8d   : > { %1355 = vmatmul.msk.f32.vlgmr.msra.gmra.mxu1 %vm127_vm0, %v121_v3  ;;  %1359 = vmatmul.msk.f32.vlgmr.msra.gmra.mxu3 %vm127_vm0, %v123_v2 }
  0x8e   : > { %1366 = vmatpush.msk.msrb.mxu3 %vm288_vm1, %v366_v11 }
  0x91   : > { %v487_v24 = vpop.permute.xlu1 %486 }
  0x92   : > { %1374 = vmatpush.xpose.msk.msra.mxu3 %vm127_vm0, %v487_v24  ;;  %v1655_v24 = vld [vmem:[%s1552_s12] sm:$0x3] }
 0x102   : > { %v149_v12 = vpop.f32.mrf.mxu0 }
 0x103   : > { %v233_v13 = vmul.f32 0.35355338, %v149_v12 }
 0x105   : > { %v238_v14 = vsel %vm237_vm2, %v233_v13, -inf }
 0x106   : > { %239 = vmax.xlane.f32.xlu0 %v238_v14 }
 0x108   : > { %v203_v15 = vpop.f32.mrf.mxu2 }
 0x109   : > { %v235_v16 = vmul.f32 0.35355338, %v203_v15 }
 0x10a   : > { %v176_v17 = vpop.f32.mrf.mxu1 }
 0x10b   : > { %v234_v18 = vmul.f32 0.35355338, %v176_v17  ;;  %v244_v19 = vsel %vm237_vm2, %v235_v16, -inf }
 0x10c   : > { %245 = vmax.xlane.f32.xlu2 %v244_v19  ;;  %v1636_v19 = vld [vmem:[%s1552_s12 + $0x4] sm:$0x3] }
 0x10d   : > { %v241_v20 = vsel %vm237_vm2, %v234_v18, -inf }
 0x10e   : > { %242 = vmax.xlane.f32.xlu1 %v241_v20 }
 0x110   : > { %v230_v21 = vpop.f32.mrf.mxu3 }
 0x111   : > { %v236_v22 = vmul.f32 0.35355338, %v230_v21 }
 0x113   : > { %v247_v23 = vsel %vm237_vm2, %v236_v22, -inf }
 0x114   : > { %248 = vmax.xlane.f32.xlu2 %v247_v23 }
 0x11a   : > { %457 = vrot.lane.b32.xlu0 %v1561_v4, %s1515_s16 }
 0x127   : > { %282 = vrot.lane.b32.xlu1 %v120_v1, %s1513_s14 }
 0x12f   : > { %311 = vrot.lane.b32.xlu1 %v121_v3, %s1513_s14 }
 0x137   : > { %399 = vrot.lane.b32.xlu1 %v1590_v25, %s1515_s16 }
 0x13f   : > { %428 = vrot.lane.b32.xlu1 %v1595_v29, %s1515_s16 }
 0x147   : > { %397 = vrot.lane.b32.xlu1 %v1590_v25, %s1514_s15 }
 0x179   : > { %v240_v27 = vpop.xlane.xlu0 %239 }
 0x17a   : > { %v250_v28 = vsub.f32 %v233_v13, %v240_v27 }
 0x17c   : > { %v254_v30 = vmul.f32 1.442695, %v250_v28 }
 0x17e   : > { %1440 = vpow2.f32 %v254_v30 }
 0x17f   : > { %v246_v31 = vpop.xlane.xlu2 %245 }
 0x180   : > { %v252_v32 = vsub.f32 %v235_v16, %v246_v31 }
 0x181   : > { %v243_v44 = vpop.xlane.xlu1 %242 }
 0x182   : > { %v258_v33 = vmul.f32 1.442695, %v252_v32  ;;  %v251_v45 = vsub.f32 %v234_v18, %v243_v44 }
 0x184   : > { %v1441_v34 = vpop.eup %1440  ;;  %1442 = vpow2.f32 %v258_v33  ;;  %v256_v46 = vmul.f32 1.442695, %v251_v45 }
 0x185   : > { %v262_v35 = vsel %vm237_vm2, %v1441_v34, 0.0 }
 0x186   : > { %263 = vadd.xlane.f32.xlu0 %v262_v35 }
 0x187   : > { %v249_v36 = vpop.xlane.xlu2 %248 }
 0x188   : > { %v253_v37 = vsub.f32 %v236_v22, %v249_v36 }
 0x18a   : > { %v1443_v38 = vpop.eup %1442  ;;  %v260_v39 = vmul.f32 1.442695, %v253_v37 }
 0x18b   : > { %v268_v40 = vsel %vm237_vm2, %v1443_v38, 0.0 }
 0x18c   : > { %1444 = vpow2.f32 %v260_v39  ;;  %269 = vadd.xlane.f32.xlu2 %v268_v40  ;;  %v458_v43 = vpop.permute.xlu0 %457  ;;  %v1667_v40 = vld [vmem:[%s1552_s12 + $0x2] sm:$0x3] }
 0x18d   : > { %1372 = vmatpush.xpose.msk.msra.mxu2 %vm127_vm0, %v458_v43  ;;  %1446 = vpow2.f32 %v256_v46 }
 0x192   : > { %v1445_v41 = vpop.eup %1444 }
 0x193   : > { %v271_v42 = vsel %vm237_vm2, %v1445_v41, 0.0  ;;  %v1447_v47 = vpop.eup %1446 }
 0x194   : > { %272 = vadd.xlane.f32.xlu2 %v271_v42  ;;  %v265_v48 = vsel %vm237_vm2, %v1447_v47, 0.0 }
 0x199   : > { %v283_v49 = vpop.permute.xlu1 %282 }
 0x19a   : > { %426 = vrot.lane.b32.xlu0 %v1595_v29, %s1514_s15  ;;  %1360 = vmatpush.msk.msrb.mxu0 %vm288_vm1, %v283_v49 }
 0x1a1   : > { %v312_v50 = vpop.permute.xlu1 %311 }
 0x1a2   : > { %1362 = vmatpush.msk.msrb.mxu1 %vm288_vm1, %v312_v50 }
 0x1a9   : > { %v400_v51 = vpop.permute.xlu1 %399 }
 0x1aa   : > { %1368 = vmatpush.xpose.msk.msra.mxu0 %vm127_vm0, %v400_v51 }
 0x1ac   : > { %484 = vrot.lane.b32.xlu2 %v1564_v5, %s1514_s15 }
 0x1b1   : > { %v429_v52 = vpop.permute.xlu1 %428 }
 0x1b2   : > { %1370 = vmatpush.xpose.msk.msra.mxu1 %vm127_vm0, %v429_v52 }
 0x1b9   : > { %v398_v60 = vpop.permute.xlu1 %397 }
 0x1d5   : > { %266 = vadd.xlane.f32.xlu2 %v265_v48 }
 0x1f9   : > { %v264_v53 = vpop.xlane.xlu0 %263 }
 0x1fa   : > { %1448 = vrcp.f32 %v264_v53 }
 0x1ff   : > { %v270_v54 = vpop.xlane.xlu2 %269 }
 0x200   : > { %v1449_v55 = vpop.eup %1448  ;;  %1450 = vrcp.f32 %v270_v54 }
 0x201   : > { %v278_v56 = vmul.f32 %v1449_v55, %v1441_v34 }
 0x203   : > { %1361 = vmatmul.msk.f32.vlgmr.msrb.gmra.mxu0 %vm284_vm3, %v278_v56 }
 0x206   : > { %v1451_v57 = vpop.eup %1450 }
 0x207   : > { %v273_v58 = vpop.xlane.xlu2 %272  ;;  %v280_v59 = vmul.f32 %v1451_v57, %v1443_v38 }
 0x208   : > { %1452 = vrcp.f32 %v273_v58  ;;  %v1686_v58 = vld [vmem:[%s1552_s12 + $0x4] sm:$0x3] }
 0x209   : > { %1365 = vmatmul.msk.f32.vlgmr.msrb.gmra.mxu2 %vm284_vm3, %v280_v59 }
 0x20b   : > { %1369 = vmatmul.msk.f32.vlgmr.msra.gmra.mxu0 %vm127_vm0, %v398_v60 }
 0x20c   : > { %v427_v3 = vpop.permute.xlu0 %426 }
 0x20e   : > { %v1453_v61 = vpop.eup %1452 }
 0x20f   : > { %v281_v62 = vmul.f32 %v1453_v61, %v1445_v41  ;;  %v485_v63 = vpop.permute.xlu2 %484 }
 0x211   : > { %1367 = vmatmul.msk.f32.vlgmr.msrb.gmra.mxu3 %vm284_vm3, %v281_v62  ;;  %1373 = vmatmul.msk.f32.vlgmr.msra.gmra.mxu2 %vm127_vm0, %v456_v26 }
 0x219   : > { %1375 = vmatmul.msk.f32.vlgmr.msra.gmra.mxu3 %vm127_vm0, %v485_v63 }
 0x248   : > { %v267_v0 = vpop.xlane.xlu2 %266 }
 0x249   : > { %1454 = vrcp.f32 %v267_v0 }
 0x24f   : > { %v1455_v1 = vpop.eup %1454 }
 0x250   : > { %v279_v2 = vmul.f32 %v1455_v1, %v1447_v47 }
 0x252   : > { %1363 = vmatmul.msk.f32.vlgmr.msrb.gmra.mxu1 %vm284_vm3, %v279_v2 }
 0x25a   : > { %1371 = vmatmul.msk.f32.vlgmr.msra.gmra.mxu1 %vm127_vm0, %v427_v3 }
 0x280   : > { %v1624_v7 = vpop.f32.mrf.mxu0 }
 0x288   : > { %v422_v11 = vpop.f32.mrf.mxu0 }
 0x289   : > { %v512_v13 = vmul.f32 0.35355338, %v422_v11 }
 0x28b   : > { %v516_v16 = vsel %vm237_vm2, %v512_v13, -inf }
 0x28c   : > { %v1622_v6 = vpop.f32.mrf.mxu2 }
 0x294   : > { %v1626_v8 = vpop.f32.mrf.mxu3  ;;  %v480_v9 = vpop.f32.mrf.mxu2 }
 0x295   : > { %v514_v10 = vmul.f32 0.35355338, %v480_v9 }
 0x297   : > { %v522_v12 = vsel %vm237_vm2, %v514_v10, -inf }
 0x298   : > { %523 = vmax.xlane.f32.xlu2 %v522_v12 }
 0x29c   : > { %v509_v14 = vpop.f32.mrf.mxu3 }
 0x29d   : > { %v515_v15 = vmul.f32 0.35355338, %v509_v14 }
 0x29f   : > { %v525_v17 = vsel %vm237_vm2, %v515_v15, -inf }
 0x2a0   : > { %526 = vmax.xlane.f32.xlu1 %v525_v17  ;;  %517 = vmax.xlane.f32.xlu2 %v516_v16 }
 0x2b9   : > { %641 = vrot.lane.b32.xlu1 %v1564_v5, %s1516_s17  ;;  %v1648_v5 = vld [vmem:[%s1552_s12 + $0x6] sm:$0x3] }
 0x2c1   : > { %731 = vrot.lane.b32.xlu1 %v1636_v19, %s1517_s18 }
 0x2c9   : > { %587 = vrot.lane.b32.xlu1 %v1595_v29, %s1516_s17 }
 0x2cf   : > { %v1633_v18 = vpop.f32.mrf.mxu1 }
 0x2d1   : > { %704 = vrot.lane.b32.xlu1 %v1667_v40, %s1518_s19 }
 0x2d7   : > { %v451_v20 = vpop.f32.mrf.mxu1 }
 0x2d8   : > { %v513_v21 = vmul.f32 0.35355338, %v451_v20 }
 0x2d9   : > { %702 = vrot.lane.b32.xlu1 %v1667_v40, %s1517_s18 }
 0x2da   : > { %v519_v22 = vsel %vm237_vm2, %v513_v21, -inf }
 0x2db   : > { %520 = vmax.xlane.f32.xlu2 %v519_v22 }
 0x2f3   : > { %614 = vrot.lane.b32.xlu2 %v1561_v4, %s1516_s17 }
 0x2fb   : > { %733 = vrot.lane.b32.xlu2 %v1636_v19, %s1518_s19 }
 0x303   : > { %762 = vrot.lane.b32.xlu2 %v1648_v5, %s1518_s19 }
 0x30b   : > { %v524_v23 = vpop.xlane.xlu2 %523  ;;  %760 = vrot.lane.b32.xlu2 %v1648_v5, %s1517_s18 }
 0x30c   : > { %v530_v37 = vsub.f32 %v514_v10, %v524_v23 }
 0x30e   : > { %v536_v39 = vmul.f32 1.442695, %v530_v37 }
 0x313   : > { %675 = vrot.lane.b32.xlu2 %v1655_v24, %s1518_s19  ;;  %v518_v26 = vpop.xlane.xlu2 %517  ;;  %v527_v30 = vpop.xlane.xlu1 %526 }
 0x314   : > { %v528_v4 = vsub.f32 %v512_v13, %v518_v26  ;;  %v531_v31 = vsub.f32 %v515_v15, %v527_v30 }
 0x316   : > { %v532_v27 = vmul.f32 1.442695, %v528_v4  ;;  %v538_v32 = vmul.f32 1.442695, %v531_v31 }
 0x318   : > { %1456 = vpow2.f32 %v532_v27 }
 0x319   : > { %1458 = vpow2.f32 %v538_v32 }
 0x31e   : > { %v1659_v28 = vpop.eup %1456 }
 0x31f   : > { %v540_v29 = vsel %vm237_vm2, %v1659_v28, 0.0  ;;  %v1459_v33 = vpop.eup %1458 }
 0x320   : > { %541 = vadd.xlane.f32.xlu0 %v540_v29  ;;  %v549_v34 = vsel %vm237_vm2, %v1459_v33, 0.0  ;;  %v1716_v29 = vld [vmem:[%s1552_s12 + $0x6] sm:$0x3] }
 0x32b   : > { %v642_v48 = vpop.permute.xlu1 %641 }
 0x32c   : > { %1382 = vmatpush.msk.msrb.mxu3 %vm288_vm1, %v642_v48 }
 0x333   : > { %v732_v52 = vpop.permute.xlu1 %731 }
 0x33b   : > { %v588_v55 = vpop.permute.xlu1 %587 }
 0x33c   : > { %550 = vadd.xlane.f32.xlu2 %v549_v34  ;;  %1378 = vmatpush.msk.msrb.mxu1 %vm288_vm1, %v588_v55 }
 0x343   : > { %v705_v56 = vpop.permute.xlu1 %704 }
 0x344   : > { %1386 = vmatpush.xpose.msk.msra.mxu1 %vm127_vm0, %v705_v56 }
 0x34b   : > { %v703_v63 = vpop.permute.xlu1 %702 }
 0x34e   : > { %v521_v35 = vpop.xlane.xlu2 %520 }
 0x34f   : > { %v529_v36 = vsub.f32 %v513_v21, %v521_v35  ;;  %v1724_v35 = vld [vmem:[%s1552_s12] sm:$0x3] }
 0x351   : > { %v534_v38 = vmul.f32 1.442695, %v529_v36 }
 0x353   : > { %1460 = vpow2.f32 %v534_v38 }
 0x354   : > { %673 = vrot.lane.b32.xlu2 %v1655_v24, %s1517_s18  ;;  %1462 = vpow2.f32 %v536_v39 }
 0x356   : > { %v615_v41 = vpop.permute.xlu2 %614 }
 0x357   : > { %1380 = vmatpush.msk.msrb.mxu2 %vm288_vm1, %v615_v41 }
 0x359   : > { %v1461_v42 = vpop.eup %1460 }
 0x35a   : > { %v543_v43 = vsel %vm237_vm2, %v1461_v42, 0.0  ;;  %v1463_v44 = vpop.eup %1462 }
 0x35b   : > { %544 = vadd.xlane.f32.xlu0 %v543_v43  ;;  %v546_v46 = vsel %vm237_vm2, %v1463_v44, 0.0 }
 0x35e   : > { %v734_v45 = vpop.permute.xlu2 %733 }
 0x35f   : > { %1388 = vmatpush.xpose.msk.msra.mxu2 %vm127_vm0, %v734_v45 }
 0x363   : > { %547 = vadd.xlane.f32.xlu0 %v546_v46 }
 0x366   : > { %v763_v47 = vpop.permute.xlu2 %762 }
 0x367   : > { %1390 = vmatpush.xpose.msk.msra.mxu3 %vm127_vm0, %v763_v47 }
 0x36e   : > { %v761_v49 = vpop.permute.xlu2 %760 }
 0x376   : > { %v676_v50 = vpop.permute.xlu2 %675 }
 0x377   : > { %560 = vrot.lane.b32.xlu0 %v1590_v25, %s1516_s17 }
 0x37f   : > { %1009 = vrot.lane.b32.xlu0 %v1686_v58, %s1519_s20 }
 0x393   : > { %v542_v25 = vpop.xlane.xlu0 %541 }
 0x3af   : > { %v551_v51 = vpop.xlane.xlu2 %550 }
 0x3b0   : > { %1464 = vrcp.f32 %v551_v51 }
 0x3b6   : > { %v1465_v53 = vpop.eup %1464 }
 0x3b7   : > { %v559_v54 = vmul.f32 %v1465_v53, %v1459_v33  ;;  %v674_v9 = vpop.permute.xlu2 %673 }
 0x3b9   : > { %1383 = vmatmul.msk.f32.vlgmr.msrb.gmra.mxu3 %vm284_vm3, %v559_v54 }
 0x3c1   : > { %1391 = vmatmul.msk.f32.vlgmr.msra.gmra.mxu3 %vm127_vm0, %v761_v49 }
 0x3ce   : > { %v545_v57 = vpop.xlane.xlu0 %544 }
 0x3cf   : > { %1466 = vrcp.f32 %v545_v57 }
 0x3d5   : > { %v1467_v59 = vpop.eup %1466 }
 0x3d6   : > { %v557_v60 = vmul.f32 %v1467_v59, %v1461_v42  ;;  %v548_v61 = vpop.xlane.xlu0 %547 }
 0x3d7   : > { %1468 = vrcp.f32 %v548_v61 }
 0x3d8   : > { %1379 = vmatmul.msk.f32.vlgmr.msrb.gmra.mxu1 %vm284_vm3, %v557_v60  ;;  %1470 = vrcp.f32 %v542_v25 }
 0x3dd   : > { %v1469_v62 = vpop.eup %1468 }
 0x3de   : > { %v558_v0 = vmul.f32 %v1469_v62, %v1463_v44  ;;  %v1471_v1 = vpop.eup %1470 }
 0x3df   : > { %v556_v2 = vmul.f32 %v1471_v1, %v1659_v28 }
 0x3e0   : > { %1381 = vmatmul.msk.f32.vlgmr.msrb.gmra.mxu2 %vm284_vm3, %v558_v0  ;;  %1387 = vmatmul.msk.f32.vlgmr.msra.gmra.mxu1 %vm127_vm0, %v703_v63 }
 0x3e8   : > { %1389 = vmatmul.msk.f32.vlgmr.msra.gmra.mxu2 %vm127_vm0, %v732_v52 }
 0x3e9   : > { %v561_v3 = vpop.permute.xlu0 %560 }
 0x3ea   : > { %1376 = vmatpush.msk.msrb.mxu0 %vm288_vm1, %v561_v3 }
 0x3eb   : > { %1377 = vmatmul.msk.f32.vlgmr.msrb.gmra.mxu0 %vm284_vm3, %v556_v2 }
 0x3ec   : > { %1384 = vmatpush.xpose.msk.msra.mxu0 %vm127_vm0, %v676_v50 }
 0x3f1   : > { %v1010_v30 = vpop.permute.xlu0 %1009 }
 0x3f3   : > { %1385 = vmatmul.msk.f32.vlgmr.msra.gmra.mxu0 %vm127_vm0, %v674_v9 }
 0x43c   : > { %v1699_v10 = vpop.f32.mrf.mxu3 }
 0x444   : > { %v785_v11 = vpop.f32.mrf.mxu3 }
 0x445   : > { %v791_v12 = vmul.f32 0.35355338, %v785_v11 }
 0x447   : > { %v801_v13 = vsel %vm237_vm2, %v791_v12, -inf }
 0x448   : > { %802 = vmax.xlane.f32.xlu0 %v801_v13 }
 0x455   : > { %v1704_v15 = vpop.f32.mrf.mxu1 }
 0x45c   : > { %1036 = vrot.lane.b32.xlu0 %v1716_v29, %s1521_s22 }
 0x45d   : > { %v727_v21 = vpop.f32.mrf.mxu1 }
 0x45e   : > { %v789_v26 = vmul.f32 0.35355338, %v727_v21 }
 0x460   : > { %v795_v28 = vsel %vm237_vm2, %v789_v26, -inf }
 0x463   : > { %v1702_v14 = vpop.f32.mrf.mxu2 }
 0x468   : > { %v1706_v16 = vpop.f32.mrf.mxu0 }
 0x46b   : > { %v756_v17 = vpop.f32.mrf.mxu2 }
 0x46c   : > { %v790_v20 = vmul.f32 0.35355338, %v756_v17 }
 0x46e   : > { %v798_v22 = vsel %vm237_vm2, %v790_v20, -inf }
 0x46f   : > { %799 = vmax.xlane.f32.xlu2 %v798_v22 }
 0x470   : > { %v698_v23 = vpop.f32.mrf.mxu0 }
 0x471   : > { %v788_v4 = vmul.f32 0.35355338, %v698_v23 }
 0x473   : > { %v792_v27 = vsel %vm237_vm2, %v788_v4, -inf }
 0x474   : > { %793 = vmax.xlane.f32.xlu1 %v792_v27 }
 0x477   : > { %796 = vmax.xlane.f32.xlu2 %v795_v28 }
 0x48d   : > { %917 = vrot.lane.b32.xlu1 %v1648_v5, %s1520_s21 }
 0x48f   : > { %890 = vrot.lane.b32.xlu2 %v1636_v19, %s1520_s21 }
 0x495   : > { %1007 = vrot.lane.b32.xlu1 %v1686_v58, %s1521_s22 }
 0x497   : > { %1038 = vrot.lane.b32.xlu2 %v1716_v29, %s1519_s20 }
 0x49d   : > { %863 = vrot.lane.b32.xlu1 %v1667_v40, %s1520_s21  ;;  %v1730_v40 = vld [vmem:[%s1552_s12 + $0x2] sm:$0x3] }
 0x49f   : > { %836 = vrot.lane.b32.xlu2 %v1655_v24, %s1520_s21 }
 0x4a7   : > { %951 = vrot.lane.b32.xlu2 %v1724_v35, %s1519_s20 }
 0x4af   : > { %978 = vrot.lane.b32.xlu2 %v1730_v40, %s1521_s22 }
 0x4bb   : > { %v803_v31 = vpop.xlane.xlu0 %802 }
 0x4bc   : > { %v807_v5 = vsub.f32 %v791_v12, %v803_v31 }
 0x4be   : > { %v814_v19 = vmul.f32 1.442695, %v807_v5 }
 0x4c0   : > { %1472 = vpow2.f32 %v814_v19 }
 0x4c6   : > { %v1473_v32 = vpop.eup %1472 }
 0x4c7   : > { %v825_v33 = vsel %vm237_vm2, %v1473_v32, 0.0 }
 0x4c8   : > { %826 = vadd.xlane.f32.xlu1 %v825_v33 }
 0x4ce   : > { %v1037_v57 = vpop.permute.xlu0 %1036 }
 0x4e1   : > { %949 = vrot.lane.b32.xlu1 %v1724_v35, %s1521_s22 }
 0x4e2   : > { %v800_v34 = vpop.xlane.xlu2 %799 }
 0x4e3   : > { %v806_v43 = vsub.f32 %v790_v20, %v800_v34 }
 0x4e5   : > { %v812_v46 = vmul.f32 1.442695, %v806_v43 }
 0x4e7   : > { %v794_v36 = vpop.xlane.xlu1 %793 }
 0x4e8   : > { %v804_v37 = vsub.f32 %v788_v4, %v794_v36 }
 0x4ea   : > { %v808_v24 = vmul.f32 1.442695, %v804_v37  ;;  %v797_v38 = vpop.xlane.xlu2 %796 }
 0x4eb   : > { %v805_v39 = vsub.f32 %v789_v26, %v797_v38 }
 0x4ec   : > { %1474 = vpow2.f32 %v808_v24 }
 0x4ed   : > { %v810_v41 = vmul.f32 1.442695, %v805_v39 }
 0x4ef   : > { %1476 = vpow2.f32 %v810_v41 }
 0x4f0   : > { %1478 = vpow2.f32 %v812_v46 }
 0x4f2   : > { %v1475_v42 = vpop.eup %1474  ;;  %v891_v44 = vpop.permute.xlu2 %890 }
 0x4f3   : > { %1396 = vmatpush.msk.msrb.mxu2 %vm288_vm1, %v891_v44  ;;  %v816_v45 = vsel %vm237_vm2, %v1475_v42, 0.0 }
 0x4f4   : > { %817 = vadd.xlane.f32.xlu0 %v816_v45 }
 0x4f5   : > { %1404 = vmatpush.xpose.msk.msra.mxu2 %vm127_vm0, %v1010_v30  ;;  %v1477_v47 = vpop.eup %1476 }
 0x4f6   : > { %v819_v48 = vsel %vm237_vm2, %v1477_v47, 0.0  ;;  %v1479_v50 = vpop.eup %1478 }
 0x4f7   : > { %v822_v51 = vsel %vm237_vm2, %v1479_v50, 0.0 }
 0x4fa   : > { %v1039_v54 = vpop.permute.xlu2 %1038 }
 0x4fc   : > { %820 = vadd.xlane.f32.xlu0 %v819_v48 }
 0x4ff   : > { %v918_v49 = vpop.permute.xlu1 %917 }
 0x500   : > { %1398 = vmatpush.msk.msrb.mxu3 %vm288_vm1, %v918_v49 }
 0x502   : > { %1406 = vmatpush.xpose.msk.msra.mxu3 %vm127_vm0, %v1039_v54  ;;  %v837_v59 = vpop.permute.xlu2 %836 }
 0x503   : > { %1392 = vmatpush.msk.msrb.mxu0 %vm288_vm1, %v837_v59 }
 0x504   : > { %823 = vadd.xlane.f32.xlu0 %v822_v51 }
 0x507   : > { %v1008_v52 = vpop.permute.xlu1 %1007 }
 0x50a   : > { %v952_v60 = vpop.permute.xlu2 %951 }
 0x50b   : > { %1400 = vmatpush.xpose.msk.msra.mxu0 %vm127_vm0, %v952_v60 }
 0x50f   : > { %v864_v53 = vpop.permute.xlu1 %863 }
 0x510   : > { %1394 = vmatpush.msk.msrb.mxu1 %vm288_vm1, %v864_v53 }
 0x512   : > { %v979_v17 = vpop.permute.xlu2 %978 }
 0x518   : > { %980 = vrot.lane.b32.xlu0 %v1730_v40, %s1519_s20 }
 0x53b   : > { %v827_v55 = vpop.xlane.xlu1 %826 }
 0x53c   : > { %1480 = vrcp.f32 %v827_v55 }
 0x542   : > { %v1481_v25 = vpop.eup %1480 }
 0x543   : > { %v835_v56 = vmul.f32 %v1481_v25, %v1473_v32 }
 0x545   : > { %1399 = vmatmul.msk.f32.vlgmr.msrb.gmra.mxu3 %vm284_vm3, %v835_v56 }
 0x54d   : > { %1407 = vmatmul.msk.f32.vlgmr.msra.gmra.mxu3 %vm127_vm0, %v1037_v57 }
 0x553   : > { %v950_v2 = vpop.permute.xlu1 %949 }
 0x567   : > { %v818_v61 = vpop.xlane.xlu0 %817 }
 0x568   : > { %1482 = vrcp.f32 %v818_v61 }
 0x56e   : > { %v1483_v62 = vpop.eup %1482 }
 0x56f   : > { %v832_v63 = vmul.f32 %v1483_v62, %v1475_v42  ;;  %v821_v0 = vpop.xlane.xlu0 %820 }
 0x570   : > { %1484 = vrcp.f32 %v821_v0 }
 0x571   : > { %1393 = vmatmul.msk.f32.vlgmr.msrb.gmra.mxu0 %vm284_vm3, %v832_v63 }
 0x576   : > { %v1485_v1 = vpop.eup %1484 }
 0x577   : > { %v833_v3 = vmul.f32 %v1485_v1, %v1477_v47  ;;  %v824_v9 = vpop.xlane.xlu0 %823 }
 0x578   : > { %1486 = vrcp.f32 %v824_v9 }
 0x579   : > { %1395 = vmatmul.msk.f32.vlgmr.msrb.gmra.mxu1 %vm284_vm3, %v833_v3  ;;  %1401 = vmatmul.msk.f32.vlgmr.msra.gmra.mxu0 %vm127_vm0, %v950_v2 }
 0x57e   : > { %v1487_v11 = vpop.eup %1486 }
 0x57f   : > { %v834_v12 = vmul.f32 %v1487_v11, %v1479_v50 }
 0x581   : > { %1397 = vmatmul.msk.f32.vlgmr.msrb.gmra.mxu2 %vm284_vm3, %v834_v12 }
 0x589   : > { %1405 = vmatmul.msk.f32.vlgmr.msra.gmra.mxu2 %vm127_vm0, %v1008_v52 }
 0x58a   : > { %v981_v13 = vpop.permute.xlu0 %980 }
 0x58b   : > { %1402 = vmatpush.xpose.msk.msra.mxu1 %vm127_vm0, %v981_v13 }
 0x58e   : > { %1403 = vmatmul.msk.f32.vlgmr.msra.gmra.mxu1 %vm127_vm0, %v979_v17 }
 0x5c8   : > { %v941_v20 = vpop.f32.mrf.mxu3 }
 0x5d0   : > { %v1061_v21 = vpop.f32.mrf.mxu3 }
 0x5d1   : > { %v1067_v22 = vmul.f32 0.35355338, %v1061_v21 }
 0x5d3   : > { %v1077_v23 = vsel %vm237_vm2, %v1067_v22, -inf }
 0x5d4   : > { %1078 = vmax.xlane.f32.xlu1 %v1077_v23 }
 0x5ee   : > { %v860_v26 = vpop.f32.mrf.mxu0 }
 0x5f6   : > { %v974_v4 = vpop.f32.mrf.mxu0  ;;  %v887_v31 = vpop.f32.mrf.mxu1 }
 0x5f7   : > { %v1064_v27 = vmul.f32 0.35355338, %v974_v4 }
 0x5f9   : > { %v1068_v28 = vsel %vm237_vm2, %v1064_v27, -inf }
 0x5fa   : > { %1069 = vmax.xlane.f32.xlu2 %v1068_v28 }
 0x604   : > { %v914_v30 = vpop.f32.mrf.mxu2 }
 0x60b   : > { %v1003_v32 = vpop.f32.mrf.mxu1 }
 0x60c   : > { %v1032_v5 = vpop.f32.mrf.mxu2  ;;  %v1065_v34 = vmul.f32 0.35355338, %v1003_v32 }
 0x60d   : > { %v1066_v19 = vmul.f32 0.35355338, %v1032_v5 }
 0x60e   : > { %v1071_v36 = vsel %vm237_vm2, %v1065_v34, -inf }
 0x60f   : > { %v1074_v33 = vsel %vm237_vm2, %v1066_v19, -inf }
 0x610   : > { %1075 = vmax.xlane.f32.xlu0 %v1074_v33 }
 0x612   : > { %1166 = vrot.lane.b32.xlu2 %v1686_v58, %s1522_s23 }
 0x618   : > { %1072 = vmax.xlane.f32.xlu0 %v1071_v36 }
 0x647   : > { %v1079_v37 = vpop.xlane.xlu1 %1078 }
 0x648   : > { %v1083_v24 = vsub.f32 %v1067_v22, %v1079_v37 }
 0x64a   : > { %v1090_v38 = vmul.f32 1.442695, %v1083_v24 }
 0x64c   : > { %1488 = vpow2.f32 %v1090_v38 }
 0x652   : > { %v1489_v39 = vpop.eup %1488 }
 0x653   : > { %v1101_v41 = vsel %vm237_vm2, %v1489_v39, 0.0 }
 0x654   : > { %1102 = vadd.xlane.f32.xlu2 %v1101_v41 }
 0x66c   : > { %1139 = vrot.lane.b32.xlu2 %v1730_v40, %s1522_s23 }
 0x66d   : > { %v1070_v42 = vpop.xlane.xlu2 %1069 }
 0x66e   : > { %v1080_v43 = vsub.f32 %v1064_v27, %v1070_v42 }
 0x670   : > { %v1084_v44 = vmul.f32 1.442695, %v1080_v43 }
 0x672   : > { %1490 = vpow2.f32 %v1084_v44 }
 0x674   : > { %1226 = vrot.lane.b32.xlu2 %v1704_v15, %s1523_s24 }
 0x675   : > { %v1167_v52 = vpop.permute.xlu2 %1166 }
 0x676   : > { %1412 = vmatpush.msk.msrb.mxu2 %vm288_vm1, %v1167_v52 }
 0x678   : > { %v1491_v58 = vpop.eup %1490 }
 0x679   : > { %v1092_v45 = vsel %vm237_vm2, %v1491_v58, 0.0 }
 0x67a   : > { %1093 = vadd.xlane.f32.xlu0 %v1092_v45 }
 0x67c   : > { %1242 = vrot.lane.b32.xlu2 %v887_v31, %s1524_s25 }
 0x683   : > { %v1076_v46 = vpop.xlane.xlu0 %1075 }
 0x684   : > { %1244 = vrot.lane.b32.xlu2 %v914_v30, %s1524_s25  ;;  %v1082_v49 = vsub.f32 %v1066_v19, %v1076_v46 }
 0x686   : > { %v1088_v40 = vmul.f32 1.442695, %v1082_v49 }
 0x68b   : > { %v1073_v47 = vpop.xlane.xlu0 %1072 }
 0x68c   : > { %v1081_v48 = vsub.f32 %v1065_v34, %v1073_v47 }
 0x68e   : > { %v1086_v50 = vmul.f32 1.442695, %v1081_v48  ;;  %1193 = vrot.lane.b32.xlu0 %v1716_v29, %s1522_s23 }
 0x690   : > { %1492 = vpow2.f32 %v1086_v50 }
 0x691   : > { %1494 = vpow2.f32 %v1088_v40 }
 0x696   : > { %v1493_v51 = vpop.eup %1492  ;;  %1224 = vrot.lane.b32.xlu0 %v1706_v16, %s1523_s24 }
 0x697   : > { %v1095_v15 = vsel %vm237_vm2, %v1493_v51, 0.0  ;;  %v1495_v53 = vpop.eup %1494 }
 0x698   : > { %1096 = vadd.xlane.f32.xlu1 %v1095_v15  ;;  %v1098_v54 = vsel %vm237_vm2, %v1495_v53, 0.0 }
 0x69e   : > { %1228 = vrot.lane.b32.xlu0 %v1702_v14, %s1523_s24 }
 0x6a0   : > { %1099 = vadd.xlane.f32.xlu1 %v1098_v54 }
 0x6a6   : > { %1230 = vrot.lane.b32.xlu0 %v1699_v10, %s1523_s24 }
 0x6ae   : > { %1246 = vrot.lane.b32.xlu0 %v941_v20, %s1524_s25 }
 0x6b9   : > { %1112 = vrot.lane.b32.xlu1 %v1724_v35, %s1522_s23 }
 0x6c1   : > { %1240 = vrot.lane.b32.xlu1 %v860_v26, %s1524_s25 }
 0x6c7   : > { %v1103_v16 = vpop.xlane.xlu2 %1102 }
 0x6c8   : > { %1496 = vrcp.f32 %v1103_v16 }
 0x6ce   : > { %v1497_v25 = vpop.eup %1496 }
 0x6cf   : > { %v1140_v29 = vpop.permute.xlu2 %1139  ;;  %v1111_v56 = vmul.f32 %v1497_v25, %v1489_v39 }
 0x6d0   : > { %1410 = vmatpush.msk.msrb.mxu1 %vm288_vm1, %v1140_v29 }
 0x6d7   : > { %v1227_v11 = vpop.permute.xlu2 %1226 }
 0x6df   : > { %v1243_v13 = vpop.permute.xlu2 %1242 }
 0x6e7   : > { %v1245_v21 = vpop.permute.xlu2 %1244 }
 0x6ed   : > { %v1094_v55 = vpop.xlane.xlu0 %1093 }
 0x700   : > { %v1194_v57 = vpop.permute.xlu0 %1193 }
 0x701   : > { %1414 = vmatpush.msk.msrb.mxu3 %vm288_vm1, %v1194_v57 }
 0x702   : > { %1415 = vmatmul.msk.f32.vlgmr.msrb.gmra.mxu3 %vm284_vm3, %v1111_v56 }
 0x708   : > { %v1225_v12 = vpop.permute.xlu0 %1224 }
 0x709   : > { %v1268_v22 = vsel %vm127_vm0, %v1624_v7, %v1225_v12  ;;  %v1269_v7 = vsel %vm127_vm0, %v1633_v18, %v1227_v11 }
 0x70a   : > { %v1274_v31 = vsel %vm1272_vm4, %v1269_v7, %v1243_v13 }
 0x70b   : > { %v1097_v14 = vpop.xlane.xlu1 %1096 }
 0x70c   : > { %1498 = vrcp.f32 %v1097_v14 }
 0x710   : > { %v1229_v20 = vpop.permute.xlu0 %1228 }
 0x711   : > { %v1270_v28 = vsel %vm127_vm0, %v1622_v6, %v1229_v20 }
 0x712   : > { %v1499_v10 = vpop.eup %1498  ;;  %v1275_v19 = vsel %vm1272_vm4, %v1270_v28, %v1245_v21 }
 0x713   : > { %v1109_v59 = vmul.f32 %v1499_v10, %v1493_v51  ;;  %v1100_v60 = vpop.xlane.xlu1 %1099 }
 0x714   : > { %1500 = vrcp.f32 %v1100_v60 }
 0x715   : > { %1411 = vmatmul.msk.f32.vlgmr.msrb.gmra.mxu1 %vm284_vm3, %v1109_v59  ;;  %1502 = vrcp.f32 %v1094_v55 }
 0x718   : > { %v1231_v27 = vpop.permute.xlu0 %1230 }
 0x719   : > { %v1271_v6 = vsel %vm127_vm0, %v1626_v8, %v1231_v27 }
 0x71a   : > { %v1501_v35 = vpop.eup %1500 }
 0x71b   : > { %v1110_v61 = vmul.f32 %v1501_v35, %v1495_v53  ;;  %v1503_v62 = vpop.eup %1502 }
 0x71c   : > { %v1108_v63 = vmul.f32 %v1503_v62, %v1491_v58 }
 0x71d   : > { %1413 = vmatmul.msk.f32.vlgmr.msrb.gmra.mxu2 %vm284_vm3, %v1110_v61 }
 0x720   : > { %v1247_v34 = vpop.permute.xlu0 %1246 }
 0x721   : > { %v1276_v18 = vsel %vm1272_vm4, %v1271_v6, %v1247_v34 }
 0x72b   : > { %v1113_v0 = vpop.permute.xlu1 %1112 }
 0x72c   : > { %1408 = vmatpush.msk.msrb.mxu0 %vm288_vm1, %v1113_v0 }
 0x72d   : > { %1409 = vmatmul.msk.f32.vlgmr.msrb.gmra.mxu0 %vm284_vm3, %v1108_v63 }
 0x733   : > { %v1241_v17 = vpop.permute.xlu1 %1240 }
 0x734   : > { %v1273_v23 = vsel %vm1272_vm4, %v1268_v22, %v1241_v17 }
 0x785   : > { %v1217_v9 = vpop.f32.mrf.mxu3 }
 0x792   : > { %v1163_v3 = vpop.f32.mrf.mxu1 }
 0x7a0   : > { %v1190_v1 = vpop.f32.mrf.mxu2 }
 0x7a1   : > { %1260 = vrot.lane.b32.xlu2 %v1190_v1, %s1525_s26 }
 0x7aa   : > { %v1136_v2 = vpop.f32.mrf.mxu0 }
 0x7ab   : > { %1256 = vrot.lane.b32.xlu1 %v1136_v2, %s1525_s26 }
 0x7b3   : > { %1258 = vrot.lane.b32.xlu1 %v1163_v3, %s1525_s26 }
 0x7bb   : > { %1262 = vrot.lane.b32.xlu1 %v1217_v9, %s1525_s26 }
 0x7fb   : > { %v1261_v30 = vpop.permute.xlu2 %1260 }
 0x7fc   : > { %v1280_v33 = vsel %vm1277_vm6, %v1275_v19, %v1261_v30 }
 0x7fd   : > { %1285 = vst.msk [vmem:[%s118_s29 + $0x4] sm:$0x3] %vm1282_vm5, %v1280_v33 }
 0x81d   : > { %v1257_v26 = vpop.permute.xlu1 %1256 }
 0x81e   : > { %v1278_v4 = vsel %vm1277_vm6, %v1273_v23, %v1257_v26 }
 0x81f   : > { %1283 = vst.msk [vmem:[%s118_s29] sm:$0x3] %vm1282_vm5, %v1278_v4 }
 0x825   : > { %v1259_v5 = vpop.permute.xlu1 %1258 }
 0x826   : > { %v1279_v32 = vsel %vm1277_vm6, %v1274_v31, %v1259_v5 }
 0x827   : > { %1284 = vst.msk [vmem:[%s118_s29 + $0x2] sm:$0x3] %vm1282_vm5, %v1279_v32 }
 0x82d   : > { %v1263_v36 = vpop.permute.xlu1 %1262 }
 0x82e   : > { %v1281_v37 = vsel %vm1277_vm6, %v1276_v18, %v1263_v36 }
 0x82f   : > { %1286 = vst.msk [vmem:[%s118_s29 + $0x6] sm:$0x3] %vm1282_vm5, %v1281_v37 }
 0x830 PF: > { %s11_s6 = sadd.s32 1, %s1510_s6  }
 0x831   : > { %p8_p4 = scmp.ge.s32.totalorder %s11_s6, 4  }
 0x833   :  { %10 = sbr.rel (!%p8_p4) target bundleno = 1 (0x1), region = 54 }

// kernel: forward.13
= control target key start
LH: loop header
LB: loop body
LE: loop exit
PB: predicated region body
PF: predicated region fallthrough
CT: control target
= control target key end

     0   :  { %8 = vsyncpa [#allocation3], 0  ;;  %s640_s0 = inlined_call_operand.vmem [shape: f32[16,32], index: 0, kind: input, shape index: {}]   ;;  %s641_s1 = inlined_call_operand.vmem [shape: f32[32,64], index: 1, kind: input, shape index: {}]   ;;  %s642_s2 = inlined_call_operand.vmem [shape: f32[1,64], index: 2, kind: input, shape index: {}]   ;;  %s643_s3 = inlined_call_operand.hbm [shape: f32[16,64], index: 3, kind: output, shape index: {}]  }
   0x1   :  { %10 = vsyncpa [#allocation3 + $0x1], 0  ;;  %s528_s12 = smov 0   ;;  %s530_s13 = smov 0  }
   0x2   :  { %s532_s14 = smov 0   ;;  %s534_s15 = smov 0  }
   0x3   :  { %s536_s16 = smov 0   ;;  %s538_s17 = smov 0  }
   0x4 LB: > { %s358_s18 = sadd.s32 4294967295, %s506_s17   ;;  %s359_s19 = sadd.s32 4294967294, %s506_s17   ;;  %s506_s17 = sphi %s538_s17, %s16_s17   ;;  %s502_s16 = sphi %s536_s16, %s650_s16   ;;  %s498_s15 = sphi %s534_s15, %s649_s15   ;;  %s494_s14 = sphi %s532_s14, %s648_s14   ;;  %s490_s13 = sphi %s530_s13, %s647_s13   ;;  %s486_s12 = sphi %s528_s12, %s646_s12  }
   0x5   : > { %s28_s20 = sadd.s32 1, %s502_s16  ;;  %s115_s21 = sadd.s32 1, %s494_s14 }
   0x6   : > { %p30_p0 = scmp.ge.s32.totalorder %s28_s20, 2  ;;  %p125_p1 = scmp.ne.s32.totalorder %s494_s14, %s490_s13 }
   0x7   : > { %p126_p2 = scmp.eq.s32.totalorder %s358_s18, 1  ;;  %p131_p3 = scmp.ne.s32.totalorder %s490_s13, %s486_s12 }
   0x8   : > { %s652_s20 = smov (%p30_p0, %s28_s20), 0  ;;  %p132_p5 = scmp.eq.s32.totalorder %s359_s19, 1 }
   0x9   : > { %p568_p4 = por %p126_p2, %p125_p1  ;;  %s110_s23 = ssub.s32 %s502_s16, %s652_s20 }
   0xa   : > { %p364_p6 = scmp.ge.s32.totalorder %s506_s17, 1  ;;  %p113_p7 = scmp.eq.s32.totalorder %s110_s23, 0 }
   0xb   : > { %p575_p8 = por %p132_p5, %p131_p3  ;;  %p170_p9 = scmp.lt.s32.totalorder %s506_s17, 3 }
   0xc   : > { %s581_s25 = scalar_select %p113_p7, %s494_s14, %s115_s21  }
   0xd   : > { %p171_p10 = pnand %p364_p6, %p170_p9 }
   0xe   : > { %p200_p11 = scmp.lt.s32.totalorder (!%p171_p10), %s498_s15, 1  ;;  %s197_s18 = sand.u32 (!%p171_p10), 1, %s490_s13  }
   0xf   : > { %174 = sbr.rel (%p171_p10) target bundleno = 159 (0x9f), region = 32  ;;  %s365_s19 = sshll.u32 (!%p171_p10), %s197_s18, 3 }
  0x10   : > { %s369_s21 = sshll.u32 (!%p171_p10), %s498_s15, 3  ;;  %s199_s30 = scalar_lea.vmem (!%p171_p10), [#allocation2], %s365_s19 }
  0x11   : > { %s258_s27 = scalar_lea.hbm (!%p171_p10), %s643_s3, %s369_s21  ;;  %s260_s4 = sshll.u32 (!%p171_p10), %s199_s30, 4  ;;  %s261_s4 = int_to_ptr.vmem [resolvable:$true] %s260_s4 }
  0x12   : > { %s247_s6 = scalar_lea.sflag (!%p171_p10), [#allocation3], %s197_s18  ;;  %s448_s10 = scalar_lea.hbm (!%p171_p10), %s643_s3, 16 }
  0x14   : > { %v215_v0 = vld [vmem:[%s641_s1 + $0x18] sm:$0xff]  ;;  %v214_v1 = vld [vmem:[%s641_s1 + $0x10] sm:$0xff]  ;;  %v213_v2 = vld [vmem:[%s641_s1 + $0x8] sm:$0xff]  ;;  %s201_s5 = scalar_select %p200_p11, %s498_s15, 1  ;;  %vm220_vm0 = vcmask 261120   ;;  %vm244_vm1 = vcmask 523264  }
  0x15   : > { %236 = vmatpush.msra.mxu0 %v215_v0  ;;  %v212_v3 = vld [vmem:[%s641_s1] sm:$0xff] }
  0x16   : > { %s366_s8 = sshll.u32 %s201_s5, 3  ;;  %v427_v5 = vld [vmem:[%s642_s2] ss:$0 sm:$0xff]  ;;  %s262_s5 = sshll.u32 %s258_s27, 4  ;;  %s263_s5 = int_to_ptr.hbm [resolvable:$true] %s262_s5 }
  0x17   : > { %237 = vmatpush.msra.mxu0 %v214_v1  ;;  %s203_s11 = scalar_lea.vmem %s640_s0, %s366_s8  ;;  %s442_s15 = sshra.s32 %s263_s5, 4  ;;  %s443_s15 = int_to_ptr.hbm [resolvable:$true] %s442_s15 }
  0x18   : > { %v211_v4 = vld [vmem:[%s203_s11] sm:$0xff]  ;;  %s444_s7 = scalar_lea.hbm %s443_s15, 8  ;;  %p449_p1 = scmp.lt.s32.totalorder %s443_s15, %s643_s3 }
  0x19   : > { %238 = vmatpush.msra.mxu0 %v213_v2  ;;  %p445_p12 = scmp.ne.s32.totalorder %s443_s15, %s444_s7  ;;  %p450_p2 = scmp.lt.s32.totalorder %s448_s10, %s444_s7 }
  0x1b   : > { %239 = vmatpush.msra.mxu0 %v212_v3  ;;  %p446_p13 = pnand %p445_p12, %p568_p4  ;;  %p451_p3 = por %p450_p2, %p449_p1 }
  0x1c   : > { %367 = vmatmul.msk.f32.vlgmr.msra.gmra.mxu0 %vm220_vm0, %v211_v4 }
  0x1d   : > { %p447_p0 = pneg %p446_p13 }
  0x1f   : > { %p452_p5 = pnand %p451_p3, %p447_p0 }
  0x99   : > { %v241_v6 = vpop.f32.mrf.mxu0 }
  0x9a   : > { %v242_v7 = vadd.f32 %v427_v5, %v241_v6 }
  0x9c   : > { %245 = vst.msk [vmem:[%s199_s30] sm:$0xff] %vm244_vm1, %v242_v7 }
  0x9d   : > { %455 = shalt.err (!%p452_p5)
}
  0x9e   : > { %372 = dma.vmem_to_hbm [thread:$0]  (%p568_p4), %s261_s4, 128, %s263_s5, %s247_s6  }
  0x9f PF: > { %p378_p6 = scmp.ge.s32.totalorder %s506_s17, 2  ;;  %s274_s18 = sand.u32 1, %s486_s12  }
  0xa0   : > { %s275_s21 = scalar_lea.sflag [#allocation3], %s274_s18 }
  0xa1   : > { %p375_p7 = pnand %p378_p6, %p575_p8 }
  0xa3   : > { %p376_p9 = pneg %p375_p7 }
  0xa5   : > { %481 = dma.done.wait (%p376_p9), %s275_s21, 128  }
  0xa6   : > { %483 = vsyncadd (%p376_p9), %s275_s21, 4294967168  ;;  %s16_s17 = sadd.s32 1, %s506_s17   ;;  %s646_s12 = smov %s490_s13 }
  0xa7   : > { %p13_p10 = scmp.ge.s32.totalorder %s16_s17, 4   ;;  %s647_s13 = smov %s494_s14 }
  0xa8   : > { %s648_s14 = smov %s581_s25  ;;  %s649_s15 = smov %s502_s16 }
  0xa9   : > { %s650_s16 = smov %s652_s20  ;;  %15 = sbr.rel (!%p13_p10) target bundleno = 4 (0x4), region = 73 }
  0xae   :  { %281 = vsyncpa [#allocation3], 1 }
  0xaf   :  { %283 = vsyncpa [#allocation3 + $0x1], 1 }

// kernel: forward.9
= control target key start
LH: loop header
LB: loop body
LE: loop exit
PB: predicated region body
PF: predicated region fallthrough
CT: control target
= control target key end

     0   :  { %s1740_s21 = smov 0   ;;  %s2833_s0 = inlined_call_operand.vmem [shape: f32[16,32], index: 0, kind: input, shape index: {}]   ;;  %s2834_s1 = inlined_call_operand.vmem [shape: f32[16,32], index: 1, kind: input, shape index: {}]   ;;  %s2835_s2 = inlined_call_operand.vmem [shape: f32[32,32], index: 2, kind: input, shape index: {}]   ;;  %s2836_s3 = inlined_call_operand.vmem [shape: f32[1,32], index: 3, kind: input, shape index: {}]   ;;  %s2837_s4 = inlined_call_operand.vmem [shape: f32[1,32], index: 4, kind: input, shape index: {}]   ;;  %s2838_s5 = inlined_call_operand.vmem [shape: f32[1,32], index: 5, kind: input, shape index: {}]   ;;  %s2839_s6 = inlined_call_operand.vmem [shape: f32[32,2048], index: 6, kind: input, shape index: {}]   ;;  %s2840_s7 = inlined_call_operand.vmem [shape: f32[1,2048], index: 7, kind: input, shape index: {}]   ;;  %s2841_s8 = inlined_call_operand.vmem [shape: f32[2048,32], index: 8, kind: input, shape index: {}]   ;;  %s2842_s9 = inlined_call_operand.vmem [shape: f32[1,32], index: 9, kind: input, shape index: {}]   ;;  %s2843_s10 = inlined_call_operand.vmem [shape: f32[1,32], index: 10, kind: input, shape index: {}]   ;;  %s2844_s11 = inlined_call_operand.vmem [shape: f32[1,32], index: 11, kind: input, shape index: {}]   ;;  %s2845_s12 = inlined_call_operand.vmem [shape: f32[16,32], index: 12, kind: output, shape index: {}]  }
   0x1 LB: > { %s1618_s22 = sadd.s32 4294967295, %s1672_s21   ;;  %p1622_p0 = scmp.ge.s32.totalorder %s1672_s21, 1  ;;  %s1672_s21 = sphi %s1740_s21, %s22_s21  }
   0x2   : > { %p370_p1 = scmp.lt.s32.totalorder %s1672_s21, 3 }
   0x4   : > { %p371_p2 = pnand %p1622_p0, %p370_p1 }
   0x5   : > { %p414_p3 = scmp.lt.s32.totalorder (!%p371_p2), %s1618_s22, 1 }
   0x6   : > { %374 = sbr.rel (%p371_p2) target bundleno = 1031 (0x407), region = 68 }
   0xb   : > { %v430_v0 = vld [vmem:[%s2835_s2 + $0x18] sm:$0xff]  ;;  %v429_v1 = vld [vmem:[%s2835_s2 + $0x10] sm:$0xff]  ;;  %v428_v2 = vld [vmem:[%s2835_s2 + $0x8] sm:$0xff]  ;;  %s2847_s22 = smov (!%p414_p3, %s1618_s22), 1  ;;  %vm435_vm0 = vcmask 261120   ;;  %v1674_v11 = vmov 32.0  }
   0xc   : > { %451 = vmatpush.msra.mxu0 %v430_v0  ;;  %v427_v3 = vld [vmem:[%s2835_s2] sm:$0xff]  ;;  %s1760_s13 = sshll.u32 %s2847_s22, 3  ;;  %1660 = vrcp.f32 %v1674_v11  ;;  %v549_v24 = vld [vmem:[%s2839_s6 + $0x188] sm:$0xff]  ;;  %v550_v25 = vld [vmem:[%s2839_s6 + $0x190] sm:$0xff] }
   0xd   : > { %s417_s16 = scalar_lea.vmem %s2833_s0, %s1760_s13  ;;  %v1654_v5 = vld [vmem:[%s2836_s3] ss:$0 sm:$0xff]  ;;  %s421_s22 = scalar_lea.vmem %s2834_s1, %s1760_s13  ;;  %635 = vmatpush.msra.mxu2 %v549_v24  ;;  %v551_v26 = vld [vmem:[%s2839_s6 + $0x198] sm:$0xff]  ;;  %655 = vmatpush.msra.mxu3 %v550_v25  ;;  %v533_v28 = vld [vmem:[%s2839_s6 + $0x108] sm:$0xff] }
   0xe   : > { %452 = vmatpush.msra.mxu0 %v429_v1  ;;  %v426_v4 = vld [vmem:[%s417_s16] sm:$0xff]  ;;  %v534_v29 = vld [vmem:[%s2839_s6 + $0x110] sm:$0xff]  ;;  %v535_v30 = vld [vmem:[%s2839_s6 + $0x118] sm:$0xff]  ;;  %s425_s23 = scalar_lea.vmem %s2845_s12, %s1760_s13 }
   0xf   : > { %v459_v7 = vld [vmem:[%s421_s22] sm:$0xff]  ;;  %636 = vmatpush.msra.mxu2 %v533_v28  ;;  %656 = vmatpush.msra.mxu3 %v534_v29  ;;  %v517_v32 = vld [vmem:[%s2839_s6 + $0x88] sm:$0xff]  ;;  %v518_v33 = vld [vmem:[%s2839_s6 + $0x90] sm:$0xff] }
  0x10   : > { %453 = vmatpush.msra.mxu0 %v428_v2  ;;  %v548_v23 = vld [vmem:[%s2839_s6 + $0x180] sm:$0xff]  ;;  %v519_v34 = vld [vmem:[%s2839_s6 + $0x98] sm:$0xff]  ;;  %v501_v36 = vld [vmem:[%s2839_s6 + $0x8] sm:$0xff] }
  0x11   : > { %615 = vmatpush.msra.mxu1 %v548_v23  ;;  %v532_v27 = vld [vmem:[%s2839_s6 + $0x100] sm:$0xff]  ;;  %637 = vmatpush.msra.mxu2 %v517_v32  ;;  %v502_v37 = vld [vmem:[%s2839_s6 + $0x10] sm:$0xff]  ;;  %v503_v38 = vld [vmem:[%s2839_s6 + $0x18] sm:$0xff] }
  0x12   : > { %454 = vmatpush.msra.mxu0 %v427_v3  ;;  %v1661_v12 = vpop.eup %1660  ;;  %v516_v31 = vld [vmem:[%s2839_s6 + $0x80] sm:$0xff]  ;;  %657 = vmatpush.msra.mxu3 %v518_v33  ;;  %v553_v40 = vld [vmem:[%s2839_s6 + $0x1a8] sm:$0xff]  ;;  %v554_v41 = vld [vmem:[%s2839_s6 + $0x1b0] sm:$0xff] }
  0x13   : > { %1626 = vmatmul.msk.f32.vlgmr.msra.gmra.mxu0 %vm435_vm0, %v426_v4  ;;  %v467_v13 = vmul.f32 32.0, %v1661_v12  ;;  %vm471_vm1 = vweird.f32 %v1661_v12  ;;  %616 = vmatpush.msra.mxu1 %v532_v27  ;;  %v500_v35 = vld [vmem:[%s2839_s6] sm:$0xff]  ;;  %v555_v42 = vld [vmem:[%s2839_s6 + $0x1b8] sm:$0xff]  ;;  %v537_v44 = vld [vmem:[%s2839_s6 + $0x128] sm:$0xff] }
  0x14   : > { %675 = vmatpush.msrb.mxu0 %v551_v26  ;;  %638 = vmatpush.msra.mxu2 %v501_v36  ;;  %v552_v39 = vld [vmem:[%s2839_s6 + $0x1a0] sm:$0xff]  ;;  %v538_v46 = vld [vmem:[%s2839_s6 + $0x130] sm:$0xff]  ;;  %v539_v47 = vld [vmem:[%s2839_s6 + $0x138] sm:$0xff] }
  0x15   : > { %v468_v14 = vsub.f32 1.0, %v467_v13  ;;  %617 = vmatpush.msra.mxu1 %v516_v31  ;;  %658 = vmatpush.msra.mxu3 %v502_v37  ;;  %v536_v43 = vld [vmem:[%s2839_s6 + $0x120] sm:$0xff]  ;;  %v521_v50 = vld [vmem:[%s2839_s6 + $0xa8] sm:$0xff]  ;;  %v522_v51 = vld [vmem:[%s2839_s6 + $0xb0] sm:$0xff] }
  0x16   : > { %676 = vmatpush.msrb.mxu0 %v535_v30  ;;  %715 = vmatpush.msrb.mxu2 %v553_v40  ;;  %v520_v48 = vld [vmem:[%s2839_s6 + $0xa0] sm:$0xff]  ;;  %v523_v52 = vld [vmem:[%s2839_s6 + $0xb8] sm:$0xff]  ;;  %v505_v54 = vld [vmem:[%s2839_s6 + $0x28] sm:$0xff] }
  0x17   : > { %v469_v15 = vmul.f32 %v1661_v12, %v468_v14  ;;  %618 = vmatpush.msra.mxu1 %v500_v35  ;;  %735 = vmatpush.msrb.mxu3 %v554_v41  ;;  %v504_v53 = vld [vmem:[%s2839_s6 + $0x20] sm:$0xff]  ;;  %v506_v56 = vld [vmem:[%s2839_s6 + $0x30] sm:$0xff]  ;;  %v507_v57 = vld [vmem:[%s2839_s6 + $0x38] sm:$0xff] }
  0x18   : > { %677 = vmatpush.msrb.mxu0 %v519_v34  ;;  %716 = vmatpush.msrb.mxu2 %v537_v44  ;;  %v1655_v0 = vld [vmem:[%s2837_s4] ss:$0 sm:$0xff]  ;;  %v541_v11 = vld [vmem:[%s2839_s6 + $0x148] sm:$0xff]  ;;  %v543_v13 = vld [vmem:[%s2839_s6 + $0x158] sm:$0xff] }
  0x19   : > { %v470_v16 = vadd.f32 %v1661_v12, %v469_v15  ;;  %695 = vmatpush.msrb.mxu1 %v552_v39  ;;  %736 = vmatpush.msrb.mxu3 %v538_v46  ;;  %v1656_v2 = vld [vmem:[%s2838_s5] ss:$0 sm:$0xff]  ;;  %v525_v15 = vld [vmem:[%s2839_s6 + $0xc8] sm:$0xff]  ;;  %v562_v25 = vld [vmem:[%s2839_s6 + $0x1f0] sm:$0xff] }
  0x1a   : > { %678 = vmatpush.msrb.mxu0 %v503_v38  ;;  %717 = vmatpush.msrb.mxu2 %v521_v50  ;;  %v524_v14 = vld [vmem:[%s2839_s6 + $0xc0] sm:$0xff]  ;;  %v561_v24 = vld [vmem:[%s2839_s6 + $0x1e8] sm:$0xff]  ;;  %v563_v26 = vld [vmem:[%s2839_s6 + $0x1f8] sm:$0xff] }
  0x1b   : > { %v1775_v17 = vsel %vm471_vm1, %v1661_v12, %v470_v16  ;;  %696 = vmatpush.msrb.mxu1 %v536_v43  ;;  %737 = vmatpush.msrb.mxu3 %v522_v51  ;;  %v542_v12 = vld [vmem:[%s2839_s6 + $0x150] sm:$0xff]  ;;  %v560_v23 = vld [vmem:[%s2839_s6 + $0x1e0] sm:$0xff]  ;;  %v545_v28 = vld [vmem:[%s2839_s6 + $0x168] sm:$0xff] }
  0x1c   : > { %755 = vmatpush.msra.mxu0 %v555_v42  ;;  %718 = vmatpush.msrb.mxu2 %v505_v54  ;;  %v526_v16 = vld [vmem:[%s2839_s6 + $0xd0] sm:$0xff]  ;;  %v544_v27 = vld [vmem:[%s2839_s6 + $0x160] sm:$0xff]  ;;  %v547_v30 = vld [vmem:[%s2839_s6 + $0x178] sm:$0xff] }
  0x1d   : > { %697 = vmatpush.msrb.mxu1 %v520_v48  ;;  %738 = vmatpush.msrb.mxu3 %v506_v56  ;;  %v546_v29 = vld [vmem:[%s2839_s6 + $0x170] sm:$0xff]  ;;  %v528_v31 = vld [vmem:[%s2839_s6 + $0xe0] sm:$0xff]  ;;  %v529_v32 = vld [vmem:[%s2839_s6 + $0xe8] sm:$0xff] }
  0x1e   : > { %756 = vmatpush.msra.mxu0 %v539_v47  ;;  %v530_v33 = vld [vmem:[%s2839_s6 + $0xf0] sm:$0xff]  ;;  %v531_v34 = vld [vmem:[%s2839_s6 + $0xf8] sm:$0xff]  ;;  %v512_v35 = vld [vmem:[%s2839_s6 + $0x60] sm:$0xff] }
  0x1f   : > { %698 = vmatpush.msrb.mxu1 %v504_v53  ;;  %v513_v36 = vld [vmem:[%s2839_s6 + $0x68] sm:$0xff]  ;;  %v514_v37 = vld [vmem:[%s2839_s6 + $0x70] sm:$0xff]  ;;  %v515_v38 = vld [vmem:[%s2839_s6 + $0x78] sm:$0xff] }
  0x20   : > { %757 = vmatpush.msra.mxu0 %v523_v52  ;;  %v954_v39 = vld [vmem:[%s2841_s8 + $0x78] sm:$0xff]  ;;  %v953_v43 = vld [vmem:[%s2841_s8 + $0x70] sm:$0xff]  ;;  %v952_v47 = vld [vmem:[%s2841_s8 + $0x68] sm:$0xff] }
  0x21   : > { %v1002_v40 = vld [vmem:[%s2841_s8 + $0x1f8] sm:$0xff]  ;;  %v1001_v44 = vld [vmem:[%s2841_s8 + $0x1f0] sm:$0xff]  ;;  %v1000_v48 = vld [vmem:[%s2841_s8 + $0x1e8] sm:$0xff] }
  0x22   : > { %758 = vmatpush.msra.mxu0 %v507_v57  ;;  %v970_v41 = vld [vmem:[%s2841_s8 + $0xf8] sm:$0xff]  ;;  %v985_v46 = vld [vmem:[%s2841_s8 + $0x170] sm:$0xff]  ;;  %v984_v50 = vld [vmem:[%s2841_s8 + $0x168] sm:$0xff] }
  0x23   : > { %v986_v42 = vld [vmem:[%s2841_s8 + $0x178] sm:$0xff]  ;;  %v951_v51 = vld [vmem:[%s2841_s8 + $0x60] sm:$0xff] }
  0x24   : > { %v999_v52 = vld [vmem:[%s2841_s8 + $0x1e0] sm:$0xff]  ;;  %v998_v56 = vld [vmem:[%s2841_s8 + $0x1d8] sm:$0xff] }
  0x25   : > { %v967_v53 = vld [vmem:[%s2841_s8 + $0xe0] sm:$0xff]  ;;  %v966_v57 = vld [vmem:[%s2841_s8 + $0xd8] sm:$0xff] }
  0x26   : > { %v983_v54 = vld [vmem:[%s2841_s8 + $0x160] sm:$0xff] }
  0x90   : > { %v456_v6 = vpop.f32.mrf.mxu0 }
  0x91   : > { %v457_v8 = vadd.f32 %v1654_v5, %v456_v6  ;;  %v556_v6 = vld [vmem:[%s2839_s6 + $0x1c0] sm:$0xff] }
  0x93   : > { %v460_v9 = vadd.f32 %v459_v7, %v457_v8  ;;  %v557_v7 = vld [vmem:[%s2839_s6 + $0x1c8] sm:$0xff]  ;;  %v558_v8 = vld [vmem:[%s2839_s6 + $0x1d0] sm:$0xff] }
  0x95   : > { %v463_v10 = vsel %vm435_vm0, %v460_v9, 0.0 }
  0x96   : > { %464 = vadd.xlane.f32.xlu0 %v463_v10  ;;  %v540_v10 = vld [vmem:[%s2839_s6 + $0x140] sm:$0xff] }
 0x109   : > { %v465_v18 = vpop.xlane.xlu0 %464 }
 0x10a   : > { %v473_v19 = vmul.f32 %v1775_v17, %v465_v18  ;;  %v527_v18 = vld [vmem:[%s2839_s6 + $0xd8] sm:$0xff] }
 0x10c   : > { %v1778_v20 = vsub.f32 %v460_v9, %v473_v19  ;;  %v559_v9 = vld [vmem:[%s2839_s6 + $0x1d8] sm:$0xff]  ;;  %v508_v19 = vld [vmem:[%s2839_s6 + $0x40] sm:$0xff] }
 0x10e   : > { %v475_v21 = vmul.f32 %v1778_v20, %v1778_v20 }
 0x110   : > { %v476_v22 = vsel %vm435_vm0, %v475_v21, 0.0  ;;  %v510_v21 = vld [vmem:[%s2839_s6 + $0x50] sm:$0xff] }
 0x111   : > { %477 = vadd.xlane.f32.xlu0 %v476_v22  ;;  %v511_v22 = vld [vmem:[%s2839_s6 + $0x58] sm:$0xff] }
 0x184   : > { %v478_v45 = vpop.xlane.xlu0 %477 }
 0x185   : > { %v479_v49 = vmul.f32 %v478_v45, %v1775_v17  ;;  %v969_v45 = vld [vmem:[%s2841_s8 + $0xf0] sm:$0xff] }
 0x187   : > { %v480_v55 = vadd.f32 1e-05, %v479_v49  ;;  %v968_v49 = vld [vmem:[%s2841_s8 + $0xe8] sm:$0xff] }
 0x189   : > { %1662 = vrsqrt.f32 %v480_v55  ;;  %vm487_vm3 = vweird.f32 %v480_v55 }
 0x18f   : > { %v1663_v58 = vpop.eup %1662 }
 0x190   : > { %v482_v59 = vmul.f32 %v1663_v58, %v480_v55  ;;  %vm488_vm2 = vweird.f32 %v1663_v58  ;;  %v950_v55 = vld [vmem:[%s2841_s8 + $0x58] sm:$0xff] }
 0x191   : > { %vm489_vm4 = vmor %vm487_vm3, %vm488_vm2 }
 0x192   : > { %v483_v60 = vmul.f32 %v1663_v58, %v482_v59  ;;  %v949_v59 = vld [vmem:[%s2841_s8 + $0x50] sm:$0xff] }
 0x194   : > { %v484_v61 = vmul.f32 0.5, %v483_v60  ;;  %v997_v60 = vld [vmem:[%s2841_s8 + $0x1d0] sm:$0xff] }
 0x196   : > { %v485_v62 = vsub.f32 1.5, %v484_v61  ;;  %v965_v61 = vld [vmem:[%s2841_s8 + $0xd0] sm:$0xff] }
 0x198   : > { %v486_v63 = vmul.f32 %v1663_v58, %v485_v62  ;;  %v981_v62 = vld [vmem:[%s2841_s8 + $0x150] sm:$0xff] }
 0x19a   : > { %v490_v1 = vsel %vm489_vm4, %v1663_v58, %v486_v63  ;;  %v982_v58 = vld [vmem:[%s2841_s8 + $0x158] sm:$0xff]  ;;  %v948_v63 = vld [vmem:[%s2841_s8 + $0x48] sm:$0xff] }
 0x19b   : > { %v491_v3 = vmul.f32 %v490_v1, %v1778_v20  ;;  %v509_v20 = vld [vmem:[%s2839_s6 + $0x48] sm:$0xff] }
 0x19c   : > { %v964_v1 = vld [vmem:[%s2841_s8 + $0xc8] sm:$0xff] }
 0x19d   : > { %v495_v4 = vmul.f32 %v1655_v0, %v491_v3  ;;  %v996_v0 = vld [vmem:[%s2841_s8 + $0x1c8] sm:$0xff]  ;;  %v947_v3 = vld [vmem:[%s2841_s8 + $0x40] sm:$0xff] }
 0x19f   : > { %v1887_v5 = vadd.f32 %v1656_v2, %v495_v4  ;;  %v980_v2 = vld [vmem:[%s2841_s8 + $0x148] sm:$0xff]  ;;  %v995_v4 = vld [vmem:[%s2841_s8 + $0x1c0] sm:$0xff] }
 0x1a1   : > { %1627 = vmatmul.msk.f32.vlgmr.msra.gmra.mxu1 %vm435_vm0, %v1887_v5  ;;  %1628 = vmatmul.msk.f32.vlgmr.msra.gmra.mxu2 %vm435_vm0, %v1887_v5 }
 0x1a2   : > { %1629 = vmatmul.msk.f32.vlgmr.msra.gmra.mxu3 %vm435_vm0, %v1887_v5  ;;  %1630 = vmatmul.msk.f32.vlgmr.msrb.gmra.mxu0 %vm435_vm0, %v1887_v5 }
 0x1a3   : > { %775 = vmatpush.msra.mxu1 %v556_v6  ;;  %795 = vmatpush.msra.mxu2 %v557_v7  ;;  %v963_v6 = vld [vmem:[%s2841_s8 + $0xc0] sm:$0xff] }
 0x1a4   : > { %815 = vmatpush.msra.mxu3 %v558_v8  ;;  %835 = vmatpush.msrb.mxu0 %v559_v9  ;;  %v979_v7 = vld [vmem:[%s2841_s8 + $0x140] sm:$0xff]  ;;  %v946_v8 = vld [vmem:[%s2841_s8 + $0x38] sm:$0xff] }
 0x1a5   : > { %776 = vmatpush.msra.mxu1 %v540_v10  ;;  %796 = vmatpush.msra.mxu2 %v541_v11  ;;  %v994_v9 = vld [vmem:[%s2841_s8 + $0x1b8] sm:$0xff] }
 0x1a6   : > { %816 = vmatpush.msra.mxu3 %v542_v12  ;;  %836 = vmatpush.msrb.mxu0 %v543_v13  ;;  %v962_v10 = vld [vmem:[%s2841_s8 + $0xb8] sm:$0xff]  ;;  %v945_v12 = vld [vmem:[%s2841_s8 + $0x30] sm:$0xff] }
 0x1a7   : > { %777 = vmatpush.msra.mxu1 %v524_v14  ;;  %797 = vmatpush.msra.mxu2 %v525_v15  ;;  %v978_v11 = vld [vmem:[%s2841_s8 + $0x138] sm:$0xff]  ;;  %v993_v13 = vld [vmem:[%s2841_s8 + $0x1b0] sm:$0xff] }
 0x1a8   : > { %817 = vmatpush.msra.mxu3 %v526_v16  ;;  %837 = vmatpush.msrb.mxu0 %v527_v18  ;;  %v961_v14 = vld [vmem:[%s2841_s8 + $0xb0] sm:$0xff]  ;;  %v944_v16 = vld [vmem:[%s2841_s8 + $0x28] sm:$0xff] }
 0x1a9   : > { %1631 = vmatmul.msk.f32.vlgmr.msrb.gmra.mxu1 %vm435_vm0, %v1887_v5  ;;  %1632 = vmatmul.msk.f32.vlgmr.msrb.gmra.mxu2 %vm435_vm0, %v1887_v5  ;;  %v977_v15 = vld [vmem:[%s2841_s8 + $0x130] sm:$0xff]  ;;  %v992_v18 = vld [vmem:[%s2841_s8 + $0x1a8] sm:$0xff] }
 0x1aa   : > { %1633 = vmatmul.msk.f32.vlgmr.msrb.gmra.mxu3 %vm435_vm0, %v1887_v5  ;;  %1634 = vmatmul.msk.f32.vlgmr.msra.gmra.mxu0 %vm435_vm0, %v1887_v5 }
 0x1ab   : > { %778 = vmatpush.msra.mxu1 %v508_v19  ;;  %798 = vmatpush.msra.mxu2 %v509_v20  ;;  %v960_v19 = vld [vmem:[%s2841_s8 + $0xa8] sm:$0xff] }
 0x1ac   : > { %818 = vmatpush.msra.mxu3 %v510_v21  ;;  %838 = vmatpush.msrb.mxu0 %v511_v22  ;;  %v976_v20 = vld [vmem:[%s2841_s8 + $0x128] sm:$0xff]  ;;  %v943_v21 = vld [vmem:[%s2841_s8 + $0x20] sm:$0xff] }
 0x1ad   : > { %855 = vmatpush.msrb.mxu1 %v560_v23  ;;  %875 = vmatpush.msrb.mxu2 %v561_v24  ;;  %v991_v22 = vld [vmem:[%s2841_s8 + $0x1a0] sm:$0xff] }
 0x1ae   : > { %895 = vmatpush.msrb.mxu3 %v562_v25  ;;  %915 = vmatpush.msra.mxu0 %v563_v26  ;;  %v959_v23 = vld [vmem:[%s2841_s8 + $0xa0] sm:$0xff]  ;;  %v942_v25 = vld [vmem:[%s2841_s8 + $0x18] sm:$0xff] }
 0x1af   : > { %856 = vmatpush.msrb.mxu1 %v544_v27  ;;  %876 = vmatpush.msrb.mxu2 %v545_v28  ;;  %v975_v24 = vld [vmem:[%s2841_s8 + $0x120] sm:$0xff]  ;;  %v990_v26 = vld [vmem:[%s2841_s8 + $0x198] sm:$0xff] }
 0x1b0   : > { %896 = vmatpush.msrb.mxu3 %v546_v29  ;;  %916 = vmatpush.msra.mxu0 %v547_v30  ;;  %v958_v27 = vld [vmem:[%s2841_s8 + $0x98] sm:$0xff]  ;;  %v941_v29 = vld [vmem:[%s2841_s8 + $0x10] sm:$0xff] }
 0x1b1   : > { %1635 = vmatmul.msk.f32.vlgmr.msra.gmra.mxu1 %vm435_vm0, %v1887_v5  ;;  %1636 = vmatmul.msk.f32.vlgmr.msra.gmra.mxu2 %vm435_vm0, %v1887_v5  ;;  %v974_v28 = vld [vmem:[%s2841_s8 + $0x118] sm:$0xff]  ;;  %v989_v30 = vld [vmem:[%s2841_s8 + $0x190] sm:$0xff] }
 0x1b2   : > { %1637 = vmatmul.msk.f32.vlgmr.msra.gmra.mxu3 %vm435_vm0, %v1887_v5  ;;  %1638 = vmatmul.msk.f32.vlgmr.msrb.gmra.mxu0 %vm435_vm0, %v1887_v5 }
 0x1b3   : > { %857 = vmatpush.msrb.mxu1 %v528_v31  ;;  %877 = vmatpush.msrb.mxu2 %v529_v32  ;;  %v957_v31 = vld [vmem:[%s2841_s8 + $0x90] sm:$0xff] }
 0x1b4   : > { %897 = vmatpush.msrb.mxu3 %v530_v33  ;;  %917 = vmatpush.msra.mxu0 %v531_v34  ;;  %v973_v32 = vld [vmem:[%s2841_s8 + $0x110] sm:$0xff]  ;;  %v940_v33 = vld [vmem:[%s2841_s8 + $0x8] sm:$0xff] }
 0x1b5   : > { %858 = vmatpush.msrb.mxu1 %v512_v35  ;;  %878 = vmatpush.msrb.mxu2 %v513_v36  ;;  %v988_v34 = vld [vmem:[%s2841_s8 + $0x188] sm:$0xff] }
 0x1b6   : > { %898 = vmatpush.msrb.mxu3 %v514_v37  ;;  %918 = vmatpush.msra.mxu0 %v515_v38  ;;  %v956_v35 = vld [vmem:[%s2841_s8 + $0x88] sm:$0xff]  ;;  %v939_v37 = vld [vmem:[%s2841_s8] sm:$0xff] }
 0x1b7   : > { %1199 = vmatpush.msra.mxu1 %v954_v39  ;;  %1219 = vmatpush.msra.mxu2 %v970_v41  ;;  %v972_v36 = vld [vmem:[%s2841_s8 + $0x108] sm:$0xff]  ;;  %v987_v38 = vld [vmem:[%s2841_s8 + $0x180] sm:$0xff]  ;;  %v1018_v39 = vld [vmem:[%s2841_s8 + $0x278] sm:$0xff] }
 0x1b8   : > { %1259 = vmatpush.msrb.mxu0 %v1002_v40  ;;  %1239 = vmatpush.msra.mxu3 %v986_v42  ;;  %v1066_v40 = vld [vmem:[%s2841_s8 + $0x3f8] sm:$0xff]  ;;  %v955_v41 = vld [vmem:[%s2841_s8 + $0x80] sm:$0xff] }
 0x1b9   : > { %1639 = vmatmul.msk.f32.vlgmr.msrb.gmra.mxu1 %vm435_vm0, %v1887_v5  ;;  %1640 = vmatmul.msk.f32.vlgmr.msrb.gmra.mxu2 %vm435_vm0, %v1887_v5  ;;  %v971_v42 = vld [vmem:[%s2841_s8 + $0x100] sm:$0xff] }
 0x1ba   : > { %1641 = vmatmul.msk.f32.vlgmr.msrb.gmra.mxu3 %vm435_vm0, %v1887_v5  ;;  %1642 = vmatmul.msk.f32.vlgmr.msra.gmra.mxu0 %vm435_vm0, %v1887_v5 }
 0x1bb   : > { %1200 = vmatpush.msra.mxu1 %v953_v43  ;;  %1260 = vmatpush.msrb.mxu0 %v1001_v44  ;;  %v1017_v43 = vld [vmem:[%s2841_s8 + $0x270] sm:$0xff] }
 0x1bc   : > { %1220 = vmatpush.msra.mxu2 %v969_v45  ;;  %1240 = vmatpush.msra.mxu3 %v985_v46  ;;  %v1065_v44 = vld [vmem:[%s2841_s8 + $0x3f0] sm:$0xff]  ;;  %v1034_v45 = vld [vmem:[%s2841_s8 + $0x2f8] sm:$0xff] }
 0x1bd   : > { %1201 = vmatpush.msra.mxu1 %v952_v47  ;;  %1261 = vmatpush.msrb.mxu0 %v1000_v48  ;;  %v1050_v46 = vld [vmem:[%s2841_s8 + $0x378] sm:$0xff]  ;;  %v1016_v47 = vld [vmem:[%s2841_s8 + $0x268] sm:$0xff] }
 0x1be   : > { %1221 = vmatpush.msra.mxu2 %v968_v49  ;;  %1241 = vmatpush.msra.mxu3 %v984_v50  ;;  %v1064_v48 = vld [vmem:[%s2841_s8 + $0x3e8] sm:$0xff]  ;;  %v1033_v49 = vld [vmem:[%s2841_s8 + $0x2f0] sm:$0xff] }
 0x1bf   : > { %1202 = vmatpush.msra.mxu1 %v951_v51  ;;  %1262 = vmatpush.msrb.mxu0 %v999_v52  ;;  %v1049_v50 = vld [vmem:[%s2841_s8 + $0x370] sm:$0xff]  ;;  %v1015_v51 = vld [vmem:[%s2841_s8 + $0x260] sm:$0xff] }
 0x1c0   : > { %1222 = vmatpush.msra.mxu2 %v967_v53  ;;  %1242 = vmatpush.msra.mxu3 %v983_v54  ;;  %v1063_v52 = vld [vmem:[%s2841_s8 + $0x3e0] sm:$0xff]  ;;  %v1032_v53 = vld [vmem:[%s2841_s8 + $0x2e8] sm:$0xff] }
 0x1c1   : > { %1203 = vmatpush.msra.mxu1 %v950_v55  ;;  %1263 = vmatpush.msrb.mxu0 %v998_v56  ;;  %v1048_v54 = vld [vmem:[%s2841_s8 + $0x368] sm:$0xff]  ;;  %v1014_v55 = vld [vmem:[%s2841_s8 + $0x258] sm:$0xff] }
 0x1c2   : > { %1223 = vmatpush.msra.mxu2 %v966_v57  ;;  %1243 = vmatpush.msra.mxu3 %v982_v58  ;;  %v1062_v56 = vld [vmem:[%s2841_s8 + $0x3d8] sm:$0xff]  ;;  %v1031_v57 = vld [vmem:[%s2841_s8 + $0x2e0] sm:$0xff] }
 0x1c3   : > { %1204 = vmatpush.msra.mxu1 %v949_v59  ;;  %1264 = vmatpush.msrb.mxu0 %v997_v60  ;;  %v1047_v58 = vld [vmem:[%s2841_s8 + $0x360] sm:$0xff]  ;;  %v1013_v59 = vld [vmem:[%s2841_s8 + $0x250] sm:$0xff] }
 0x1c4   : > { %1224 = vmatpush.msra.mxu2 %v965_v61  ;;  %1244 = vmatpush.msra.mxu3 %v981_v62  ;;  %v1061_v60 = vld [vmem:[%s2841_s8 + $0x3d0] sm:$0xff]  ;;  %v1030_v61 = vld [vmem:[%s2841_s8 + $0x2d8] sm:$0xff] }
 0x1c5   : > { %1205 = vmatpush.msra.mxu1 %v948_v63  ;;  %1265 = vmatpush.msrb.mxu0 %v996_v0  ;;  %v1046_v62 = vld [vmem:[%s2841_s8 + $0x358] sm:$0xff]  ;;  %v1012_v63 = vld [vmem:[%s2841_s8 + $0x248] sm:$0xff] }
 0x1c6   : > { %1225 = vmatpush.msra.mxu2 %v964_v1  ;;  %1245 = vmatpush.msra.mxu3 %v980_v2  ;;  %v1060_v0 = vld [vmem:[%s2841_s8 + $0x3c8] sm:$0xff]  ;;  %v1029_v1 = vld [vmem:[%s2841_s8 + $0x2d0] sm:$0xff] }
 0x1c7   : > { %1206 = vmatpush.msra.mxu1 %v947_v3  ;;  %1266 = vmatpush.msrb.mxu0 %v995_v4  ;;  %v1045_v2 = vld [vmem:[%s2841_s8 + $0x350] sm:$0xff]  ;;  %v1011_v3 = vld [vmem:[%s2841_s8 + $0x240] sm:$0xff] }
 0x1c8   : > { %1226 = vmatpush.msra.mxu2 %v963_v6  ;;  %1246 = vmatpush.msra.mxu3 %v979_v7  ;;  %v1059_v4 = vld [vmem:[%s2841_s8 + $0x3c0] sm:$0xff]  ;;  %v1028_v6 = vld [vmem:[%s2841_s8 + $0x2c8] sm:$0xff] }
 0x1c9   : > { %1207 = vmatpush.msra.mxu1 %v946_v8  ;;  %1267 = vmatpush.msrb.mxu0 %v994_v9  ;;  %v1044_v7 = vld [vmem:[%s2841_s8 + $0x348] sm:$0xff]  ;;  %v1010_v8 = vld [vmem:[%s2841_s8 + $0x238] sm:$0xff] }
 0x1ca   : > { %1227 = vmatpush.msra.mxu2 %v962_v10  ;;  %1247 = vmatpush.msra.mxu3 %v978_v11  ;;  %v1058_v9 = vld [vmem:[%s2841_s8 + $0x3b8] sm:$0xff]  ;;  %v1027_v10 = vld [vmem:[%s2841_s8 + $0x2c0] sm:$0xff] }
 0x1cb   : > { %1208 = vmatpush.msra.mxu1 %v945_v12  ;;  %1268 = vmatpush.msrb.mxu0 %v993_v13  ;;  %v1043_v11 = vld [vmem:[%s2841_s8 + $0x340] sm:$0xff]  ;;  %v1009_v12 = vld [vmem:[%s2841_s8 + $0x230] sm:$0xff] }
 0x1cc   : > { %1228 = vmatpush.msra.mxu2 %v961_v14  ;;  %1248 = vmatpush.msra.mxu3 %v977_v15  ;;  %v1057_v13 = vld [vmem:[%s2841_s8 + $0x3b0] sm:$0xff]  ;;  %v1026_v14 = vld [vmem:[%s2841_s8 + $0x2b8] sm:$0xff] }
 0x1cd   : > { %1209 = vmatpush.msra.mxu1 %v944_v16  ;;  %1269 = vmatpush.msrb.mxu0 %v992_v18  ;;  %v1042_v15 = vld [vmem:[%s2841_s8 + $0x338] sm:$0xff]  ;;  %v1008_v16 = vld [vmem:[%s2841_s8 + $0x228] sm:$0xff] }
 0x1ce   : > { %1229 = vmatpush.msra.mxu2 %v960_v19  ;;  %1249 = vmatpush.msra.mxu3 %v976_v20  ;;  %v1056_v18 = vld [vmem:[%s2841_s8 + $0x3a8] sm:$0xff]  ;;  %v1025_v19 = vld [vmem:[%s2841_s8 + $0x2b0] sm:$0xff] }
 0x1cf   : > { %1210 = vmatpush.msra.mxu1 %v943_v21  ;;  %1270 = vmatpush.msrb.mxu0 %v991_v22  ;;  %v1041_v20 = vld [vmem:[%s2841_s8 + $0x330] sm:$0xff]  ;;  %v1007_v21 = vld [vmem:[%s2841_s8 + $0x220] sm:$0xff] }
 0x1d0   : > { %1230 = vmatpush.msra.mxu2 %v959_v23  ;;  %1250 = vmatpush.msra.mxu3 %v975_v24  ;;  %v1055_v22 = vld [vmem:[%s2841_s8 + $0x3a0] sm:$0xff]  ;;  %v1006_v23 = vld [vmem:[%s2841_s8 + $0x218] sm:$0xff] }
 0x1d1   : > { %1211 = vmatpush.msra.mxu1 %v942_v25  ;;  %1271 = vmatpush.msrb.mxu0 %v990_v26  ;;  %v1054_v24 = vld [vmem:[%s2841_s8 + $0x398] sm:$0xff]  ;;  %v1005_v25 = vld [vmem:[%s2841_s8 + $0x210] sm:$0xff]  ;;  %v1024_v26 = vld [vmem:[%s2841_s8 + $0x2a8] sm:$0xff] }
 0x1d2   : > { %1231 = vmatpush.msra.mxu2 %v958_v27  ;;  %1251 = vmatpush.msra.mxu3 %v974_v28  ;;  %v1040_v27 = vld [vmem:[%s2841_s8 + $0x328] sm:$0xff]  ;;  %v1053_v28 = vld [vmem:[%s2841_s8 + $0x390] sm:$0xff] }
 0x1d3   : > { %1212 = vmatpush.msra.mxu1 %v941_v29  ;;  %1272 = vmatpush.msrb.mxu0 %v989_v30  ;;  %v1004_v29 = vld [vmem:[%s2841_s8 + $0x208] sm:$0xff]  ;;  %v1023_v30 = vld [vmem:[%s2841_s8 + $0x2a0] sm:$0xff] }
 0x1d4   : > { %1232 = vmatpush.msra.mxu2 %v957_v31  ;;  %1252 = vmatpush.msra.mxu3 %v973_v32  ;;  %v1039_v31 = vld [vmem:[%s2841_s8 + $0x320] sm:$0xff]  ;;  %v1052_v32 = vld [vmem:[%s2841_s8 + $0x388] sm:$0xff] }
 0x1d5   : > { %1213 = vmatpush.msra.mxu1 %v940_v33  ;;  %1273 = vmatpush.msrb.mxu0 %v988_v34  ;;  %v1003_v33 = vld [vmem:[%s2841_s8 + $0x200] sm:$0xff]  ;;  %v1022_v34 = vld [vmem:[%s2841_s8 + $0x298] sm:$0xff] }
 0x1d6   : > { %1233 = vmatpush.msra.mxu2 %v956_v35  ;;  %1253 = vmatpush.msra.mxu3 %v972_v36  ;;  %v1038_v35 = vld [vmem:[%s2841_s8 + $0x318] sm:$0xff]  ;;  %v1051_v36 = vld [vmem:[%s2841_s8 + $0x380] sm:$0xff] }
 0x1d7   : > { %1214 = vmatpush.msra.mxu1 %v939_v37  ;;  %1274 = vmatpush.msrb.mxu0 %v987_v38  ;;  %v1021_v37 = vld [vmem:[%s2841_s8 + $0x290] sm:$0xff] }
 0x1d8   : > { %1234 = vmatpush.msra.mxu2 %v955_v41  ;;  %1254 = vmatpush.msra.mxu3 %v971_v42  ;;  %v1037_v38 = vld [vmem:[%s2841_s8 + $0x310] sm:$0xff]  ;;  %v1019_v41 = vld [vmem:[%s2841_s8 + $0x280] sm:$0xff] }
 0x1d9   : > { %1279 = vmatpush.msrb.mxu1 %v1018_v39  ;;  %1339 = vmatpush.msra.mxu0 %v1066_v40  ;;  %v1020_v39 = vld [vmem:[%s2841_s8 + $0x288] sm:$0xff]  ;;  %v1035_v42 = vld [vmem:[%s2841_s8 + $0x300] sm:$0xff] }
 0x1da   : > { %1299 = vmatpush.msrb.mxu2 %v1034_v45  ;;  %1319 = vmatpush.msrb.mxu3 %v1050_v46  ;;  %v1036_v40 = vld [vmem:[%s2841_s8 + $0x308] sm:$0xff] }
 0x1db   : > { %1280 = vmatpush.msrb.mxu1 %v1017_v43  ;;  %1340 = vmatpush.msra.mxu0 %v1065_v44  ;;  %v2404_v43 = vld [vmem:[%s2840_s7] sm:$0xff] }
 0x1dc   : > { %1300 = vmatpush.msrb.mxu2 %v1033_v49  ;;  %1320 = vmatpush.msrb.mxu3 %v1049_v50  ;;  %v568_v44 = vperm.slane %v2404_v43, 0  ;;  %v571_v45 = vperm.slane %v2404_v43, 3 }
 0x1dd   : > { %1281 = vmatpush.msrb.mxu1 %v1016_v47  ;;  %1341 = vmatpush.msra.mxu0 %v1064_v48 }
 0x1de   : > { %1301 = vmatpush.msrb.mxu2 %v1032_v53  ;;  %1321 = vmatpush.msrb.mxu3 %v1048_v54  ;;  %v1130_v54 = vld [vmem:[%s2841_s8 + $0x5f8] sm:$0xff] }
 0x1df   : > { %1282 = vmatpush.msrb.mxu1 %v1015_v51  ;;  %1342 = vmatpush.msra.mxu0 %v1063_v52  ;;  %v1082_v51 = vld [vmem:[%s2841_s8 + $0x478] sm:$0xff]  ;;  %v569_v52 = vperm.slane %v2404_v43, 1 }
 0x1e0   : > { %1302 = vmatpush.msrb.mxu2 %v1031_v57  ;;  %1322 = vmatpush.msrb.mxu3 %v1047_v58  ;;  %v572_v57 = vperm.slane %v2404_v43, 4 }
 0x1e1   : > { %1283 = vmatpush.msrb.mxu1 %v1014_v55  ;;  %1343 = vmatpush.msra.mxu0 %v1062_v56  ;;  %v570_v55 = vperm.slane %v2404_v43, 2  ;;  %v1081_v56 = vld [vmem:[%s2841_s8 + $0x470] sm:$0xff] }
 0x1e2   : > { %1303 = vmatpush.msrb.mxu2 %v1030_v61  ;;  %1323 = vmatpush.msrb.mxu3 %v1046_v62 }
 0x1e3   : > { %1284 = vmatpush.msrb.mxu1 %v1013_v59  ;;  %1344 = vmatpush.msra.mxu0 %v1061_v60  ;;  %v1129_v59 = vld [vmem:[%s2841_s8 + $0x5f0] sm:$0xff]  ;;  %v575_v60 = vperm.slane %v2404_v43, 7 }
 0x1e4   : > { %1304 = vmatpush.msrb.mxu2 %v1029_v1  ;;  %1324 = vmatpush.msrb.mxu3 %v1045_v2  ;;  %v1128_v2 = vld [vmem:[%s2841_s8 + $0x5e8] sm:$0xff] }
 0x1e5   : > { %1285 = vmatpush.msrb.mxu1 %v1012_v63  ;;  %1345 = vmatpush.msra.mxu0 %v1060_v0  ;;  %v1080_v63 = vld [vmem:[%s2841_s8 + $0x468] sm:$0xff] }
 0x1e6   : > { %1305 = vmatpush.msrb.mxu2 %v1028_v6  ;;  %1325 = vmatpush.msrb.mxu3 %v1044_v7  ;;  %v1079_v7 = vld [vmem:[%s2841_s8 + $0x460] sm:$0xff] }
 0x1e7   : > { %1286 = vmatpush.msrb.mxu1 %v1011_v3  ;;  %1346 = vmatpush.msra.mxu0 %v1059_v4 }
 0x1e8   : > { %1306 = vmatpush.msrb.mxu2 %v1027_v10  ;;  %1326 = vmatpush.msrb.mxu3 %v1043_v11  ;;  %v1098_v10 = vld [vmem:[%s2841_s8 + $0x4f8] sm:$0xff] }
 0x1e9   : > { %1287 = vmatpush.msrb.mxu1 %v1010_v8  ;;  %1347 = vmatpush.msra.mxu0 %v1058_v9  ;;  %v1114_v11 = vld [vmem:[%s2841_s8 + $0x578] sm:$0xff] }
 0x1ea   : > { %1307 = vmatpush.msrb.mxu2 %v1026_v14  ;;  %1327 = vmatpush.msrb.mxu3 %v1042_v15  ;;  %v573_v14 = vperm.slane %v2404_v43, 5 }
 0x1eb   : > { %1288 = vmatpush.msrb.mxu1 %v1009_v12  ;;  %1348 = vmatpush.msra.mxu0 %v1057_v13  ;;  %v1127_v13 = vld [vmem:[%s2841_s8 + $0x5e0] sm:$0xff] }
 0x1ec   : > { %1308 = vmatpush.msrb.mxu2 %v1025_v19  ;;  %1328 = vmatpush.msrb.mxu3 %v1041_v20  ;;  %v1097_v19 = vld [vmem:[%s2841_s8 + $0x4f0] sm:$0xff] }
 0x1ed   : > { %1289 = vmatpush.msrb.mxu1 %v1008_v16  ;;  %1349 = vmatpush.msra.mxu0 %v1056_v18  ;;  %v1078_v16 = vld [vmem:[%s2841_s8 + $0x458] sm:$0xff]  ;;  %v574_v18 = vperm.slane %v2404_v43, 6  ;;  %v1113_v20 = vld [vmem:[%s2841_s8 + $0x570] sm:$0xff] }
 0x1ee   : > { %1309 = vmatpush.msrb.mxu2 %v1024_v26  ;;  %1329 = vmatpush.msrb.mxu3 %v1040_v27  ;;  %v1096_v26 = vld [vmem:[%s2841_s8 + $0x4e8] sm:$0xff]  ;;  %v1122_v43 = vld [vmem:[%s2841_s8 + $0x5b8] sm:$0xff] }
 0x1ef   : > { %1290 = vmatpush.msrb.mxu1 %v1007_v21  ;;  %1350 = vmatpush.msra.mxu0 %v1055_v22  ;;  %v1126_v21 = vld [vmem:[%s2841_s8 + $0x5d8] sm:$0xff]  ;;  %v1112_v27 = vld [vmem:[%s2841_s8 + $0x568] sm:$0xff] }
 0x1f0   : > { %1310 = vmatpush.msrb.mxu2 %v1023_v30  ;;  %1330 = vmatpush.msrb.mxu3 %v1039_v31  ;;  %v1076_v30 = vld [vmem:[%s2841_s8 + $0x448] sm:$0xff] }
 0x1f1   : > { %1291 = vmatpush.msrb.mxu1 %v1006_v23  ;;  %1351 = vmatpush.msra.mxu0 %v1054_v24  ;;  %v1077_v23 = vld [vmem:[%s2841_s8 + $0x450] sm:$0xff] }
 0x1f2   : > { %1311 = vmatpush.msrb.mxu2 %v1022_v34  ;;  %1331 = vmatpush.msrb.mxu3 %v1038_v35  ;;  %v1124_v35 = vld [vmem:[%s2841_s8 + $0x5c8] sm:$0xff] }
 0x1f3   : > { %1292 = vmatpush.msrb.mxu1 %v1005_v25  ;;  %1352 = vmatpush.msra.mxu0 %v1053_v28 }
 0x1f4   : > { %1312 = vmatpush.msrb.mxu2 %v1021_v37  ;;  %1332 = vmatpush.msrb.mxu3 %v1037_v38  ;;  %v1094_v37 = vld [vmem:[%s2841_s8 + $0x4d8] sm:$0xff] }
 0x1f5   : > { %1293 = vmatpush.msrb.mxu1 %v1004_v29  ;;  %1353 = vmatpush.msra.mxu0 %v1052_v32  ;;  %v1125_v29 = vld [vmem:[%s2841_s8 + $0x5d0] sm:$0xff]  ;;  %v1095_v32 = vld [vmem:[%s2841_s8 + $0x4e0] sm:$0xff]  ;;  %v1110_v38 = vld [vmem:[%s2841_s8 + $0x558] sm:$0xff] }
 0x1f6   : > { %1313 = vmatpush.msrb.mxu2 %v1020_v39  ;;  %1333 = vmatpush.msrb.mxu3 %v1036_v40  ;;  %v1123_v39 = vld [vmem:[%s2841_s8 + $0x5c0] sm:$0xff]  ;;  %v1074_v40 = vld [vmem:[%s2841_s8 + $0x438] sm:$0xff] }
 0x1f7   : > { %1294 = vmatpush.msrb.mxu1 %v1003_v33  ;;  %1354 = vmatpush.msra.mxu0 %v1051_v36  ;;  %v1111_v33 = vld [vmem:[%s2841_s8 + $0x560] sm:$0xff] }
 0x1f8   : > { %1314 = vmatpush.msrb.mxu2 %v1019_v41  ;;  %1334 = vmatpush.msrb.mxu3 %v1035_v42  ;;  %v1075_v36 = vld [vmem:[%s2841_s8 + $0x440] sm:$0xff]  ;;  %v1093_v41 = vld [vmem:[%s2841_s8 + $0x4d0] sm:$0xff] }
 0x1f9   : > { %v1109_v42 = vld [vmem:[%s2841_s8 + $0x550] sm:$0xff] }
 0x21e   : > { %v620_v46 = vpop.f32.mrf.mxu1 }
 0x21f   : > { %v621_v47 = vadd.f32 %v620_v46, %v568_v44  ;;  %v680_v48 = vpop.f32.mrf.mxu0  ;;  %v1073_v44 = vld [vmem:[%s2841_s8 + $0x430] sm:$0xff]  ;;  %v1108_v46 = vld [vmem:[%s2841_s8 + $0x548] sm:$0xff] }
 0x220   : > { %v681_v49 = vadd.f32 %v680_v48, %v571_v45  ;;  %v1092_v45 = vld [vmem:[%s2841_s8 + $0x4c8] sm:$0xff] }
 0x221   : > { %v923_v50 = vmax.f32 %v621_v47, 0.0  ;;  %v1121_v47 = vld [vmem:[%s2841_s8 + $0x5b0] sm:$0xff]  ;;  %v1072_v48 = vld [vmem:[%s2841_s8 + $0x428] sm:$0xff] }
 0x222   : > { %v926_v53 = vmax.f32 %v681_v49, 0.0  ;;  %v1091_v49 = vld [vmem:[%s2841_s8 + $0x4c0] sm:$0xff] }
 0x223   : > { %1215 = vmatmul.f32.vlgmr.msra.gmra.mxu1 %v923_v50  ;;  %v1107_v50 = vld [vmem:[%s2841_s8 + $0x540] sm:$0xff] }
 0x224   : > { %1275 = vmatmul.f32.vlgmr.msrb.gmra.mxu0 %v926_v53  ;;  %1359 = vmatpush.msra.mxu1 %v1082_v51  ;;  %v640_v58 = vpop.f32.mrf.mxu2  ;;  %v2528_v51 = vld [vmem:[%s2840_s7 + $0x8] sm:$0xff]  ;;  %v1071_v53 = vld [vmem:[%s2841_s8 + $0x420] sm:$0xff] }
 0x225   : > { %1419 = vmatpush.msrb.mxu0 %v1130_v54  ;;  %v641_v61 = vadd.f32 %v640_v58, %v569_v52  ;;  %v660_v62 = vpop.f32.mrf.mxu3  ;;  %v1120_v52 = vld [vmem:[%s2841_s8 + $0x5a8] sm:$0xff]  ;;  %v1090_v54 = vld [vmem:[%s2841_s8 + $0x4b8] sm:$0xff]  ;;  %v576_v58 = vperm.slane %v2528_v51, 0 }
 0x226   : > { %v661_v0 = vadd.f32 %v660_v62, %v570_v55  ;;  %1360 = vmatpush.msra.mxu1 %v1081_v56  ;;  %v700_v1 = vpop.f32.mrf.mxu1  ;;  %v1106_v55 = vld [vmem:[%s2841_s8 + $0x538] sm:$0xff]  ;;  %v1119_v56 = vld [vmem:[%s2841_s8 + $0x5a0] sm:$0xff]  ;;  %v579_v62 = vperm.slane %v2528_v51, 3 }
 0x227   : > { %v924_v3 = vmax.f32 %v641_v61, 0.0  ;;  %1420 = vmatpush.msrb.mxu0 %v1129_v59  ;;  %v701_v4 = vadd.f32 %v700_v1, %v572_v57  ;;  %v760_v6 = vpop.f32.mrf.mxu0  ;;  %v1070_v57 = vld [vmem:[%s2841_s8 + $0x418] sm:$0xff]  ;;  %v1089_v59 = vld [vmem:[%s2841_s8 + $0x4b0] sm:$0xff] }
 0x228   : > { %v925_v8 = vmax.f32 %v661_v0, 0.0  ;;  %v761_v9 = vadd.f32 %v760_v6, %v575_v60  ;;  %1361 = vmatpush.msra.mxu1 %v1080_v63  ;;  %v1105_v60 = vld [vmem:[%s2841_s8 + $0x530] sm:$0xff]  ;;  %v1118_v63 = vld [vmem:[%s2841_s8 + $0x598] sm:$0xff]  ;;  %v1068_v6 = vld [vmem:[%s2841_s8 + $0x408] sm:$0xff] }
 0x229   : > { %v927_v12 = vmax.f32 %v701_v4, 0.0  ;;  %1421 = vmatpush.msrb.mxu0 %v1128_v2  ;;  %1235 = vmatmul.f32.vlgmr.msra.gmra.mxu2 %v924_v3  ;;  %v1069_v0 = vld [vmem:[%s2841_s8 + $0x410] sm:$0xff]  ;;  %v1088_v2 = vld [vmem:[%s2841_s8 + $0x4a8] sm:$0xff] }
 0x22a   : > { %v930_v15 = vmax.f32 %v761_v9, 0.0  ;;  %1255 = vmatmul.f32.vlgmr.msra.gmra.mxu3 %v925_v8  ;;  %1362 = vmatpush.msra.mxu1 %v1079_v7  ;;  %v1104_v3 = vld [vmem:[%s2841_s8 + $0x528] sm:$0xff]  ;;  %v1117_v4 = vld [vmem:[%s2841_s8 + $0x590] sm:$0xff]  ;;  %v1087_v8 = vld [vmem:[%s2841_s8 + $0x4a0] sm:$0xff] }
 0x22b   : > { %1379 = vmatpush.msra.mxu2 %v1098_v10  ;;  %1399 = vmatpush.msra.mxu3 %v1114_v11  ;;  %v1103_v9 = vld [vmem:[%s2841_s8 + $0x520] sm:$0xff]  ;;  %v1116_v11 = vld [vmem:[%s2841_s8 + $0x588] sm:$0xff] }
 0x22c   : > { %1422 = vmatpush.msrb.mxu0 %v1127_v13  ;;  %1295 = vmatmul.f32.vlgmr.msrb.gmra.mxu1 %v927_v12  ;;  %v720_v22 = vpop.f32.mrf.mxu2  ;;  %v1067_v12 = vld [vmem:[%s2841_s8 + $0x400] sm:$0xff]  ;;  %v1086_v13 = vld [vmem:[%s2841_s8 + $0x498] sm:$0xff] }
 0x22d   : > { %1355 = vmatmul.f32.vlgmr.msra.gmra.mxu0 %v930_v15  ;;  %1363 = vmatpush.msra.mxu1 %v1078_v16  ;;  %v721_v24 = vadd.f32 %v720_v22, %v573_v14  ;;  %v740_v25 = vpop.f32.mrf.mxu3  ;;  %v1102_v14 = vld [vmem:[%s2841_s8 + $0x518] sm:$0xff]  ;;  %v577_v15 = vperm.slane %v2528_v51, 1  ;;  %v1115_v16 = vld [vmem:[%s2841_s8 + $0x580] sm:$0xff] }
 0x22e   : > { %1380 = vmatpush.msra.mxu2 %v1097_v19  ;;  %1400 = vmatpush.msra.mxu3 %v1113_v20  ;;  %v741_v28 = vadd.f32 %v740_v25, %v574_v18  ;;  %v780_v61 = vpop.f32.mrf.mxu1  ;;  %v578_v20 = vperm.slane %v2528_v51, 2  ;;  %v1085_v25 = vld [vmem:[%s2841_s8 + $0x490] sm:$0xff] }
 0x22f   : > { %1423 = vmatpush.msrb.mxu0 %v1126_v21  ;;  %v928_v31 = vmax.f32 %v721_v24, 0.0  ;;  %1364 = vmatpush.msra.mxu1 %v1077_v23  ;;  %v840_v1 = vpop.f32.mrf.mxu0  ;;  %v781_v7 = vadd.f32 %v780_v61, %v576_v58  ;;  %v1146_v21 = vld [vmem:[%s2841_s8 + $0x678] sm:$0xff]  ;;  %v1157_v61 = vld [vmem:[%s2841_s8 + $0x6d0] sm:$0xff] }
 0x230   : > { %v929_v34 = vmax.f32 %v741_v28, 0.0  ;;  %1381 = vmatpush.msra.mxu2 %v1096_v26  ;;  %1401 = vmatpush.msra.mxu3 %v1112_v27  ;;  %v841_v10 = vadd.f32 %v840_v1, %v579_v62  ;;  %v1194_v24 = vld [vmem:[%s2841_s8 + $0x7f8] sm:$0xff]  ;;  %v1101_v26 = vld [vmem:[%s2841_s8 + $0x510] sm:$0xff]  ;;  %v1156_v1 = vld [vmem:[%s2841_s8 + $0x6c8] sm:$0xff] }
 0x231   : > { %1424 = vmatpush.msrb.mxu0 %v1125_v29  ;;  %1365 = vmatpush.msra.mxu1 %v1076_v30  ;;  %v931_v18 = vmax.f32 %v781_v7, 0.0  ;;  %v1145_v27 = vld [vmem:[%s2841_s8 + $0x670] sm:$0xff]  ;;  %v1084_v30 = vld [vmem:[%s2841_s8 + $0x488] sm:$0xff]  ;;  %v1174_v58 = vld [vmem:[%s2841_s8 + $0x758] sm:$0xff] }
 0x232   : > { %1382 = vmatpush.msra.mxu2 %v1095_v32  ;;  %1402 = vmatpush.msra.mxu3 %v1111_v33  ;;  %v934_v22 = vmax.f32 %v841_v10, 0.0  ;;  %v1193_v29 = vld [vmem:[%s2841_s8 + $0x7f0] sm:$0xff]  ;;  %v1100_v32 = vld [vmem:[%s2841_s8 + $0x508] sm:$0xff]  ;;  %v1171_v7 = vld [vmem:[%s2841_s8 + $0x740] sm:$0xff] }
 0x233   : > { %1425 = vmatpush.msrb.mxu0 %v1124_v35  ;;  %1315 = vmatmul.f32.vlgmr.msrb.gmra.mxu2 %v928_v31  ;;  %v1144_v33 = vld [vmem:[%s2841_s8 + $0x668] sm:$0xff]  ;;  %v1083_v35 = vld [vmem:[%s2841_s8 + $0x480] sm:$0xff]  ;;  %v1173_v62 = vld [vmem:[%s2841_s8 + $0x750] sm:$0xff] }
 0x234   : > { %1335 = vmatmul.f32.vlgmr.msrb.gmra.mxu3 %v929_v34  ;;  %1366 = vmatpush.msra.mxu1 %v1075_v36  ;;  %v800_v19 = vpop.f32.mrf.mxu2  ;;  %v1192_v34 = vld [vmem:[%s2841_s8 + $0x7e8] sm:$0xff]  ;;  %v1099_v36 = vld [vmem:[%s2841_s8 + $0x500] sm:$0xff]  ;;  %v1154_v10 = vld [vmem:[%s2841_s8 + $0x6b8] sm:$0xff] }
 0x235   : > { %1383 = vmatpush.msra.mxu2 %v1094_v37  ;;  %1403 = vmatpush.msra.mxu3 %v1110_v38  ;;  %v820_v23 = vpop.f32.mrf.mxu3  ;;  %v801_v28 = vadd.f32 %v800_v19, %v577_v15  ;;  %v1143_v38 = vld [vmem:[%s2841_s8 + $0x660] sm:$0xff]  ;;  %v1153_v15 = vld [vmem:[%s2841_s8 + $0x6b0] sm:$0xff]  ;;  %v583_v19 = vperm.slane %v2528_v51, 7 }
 0x236   : > { %1426 = vmatpush.msrb.mxu0 %v1123_v39  ;;  %1367 = vmatpush.msra.mxu1 %v1074_v40  ;;  %v821_v31 = vadd.f32 %v820_v23, %v578_v20  ;;  %v1162_v40 = vld [vmem:[%s2841_s8 + $0x6f8] sm:$0xff]  ;;  %v1152_v23 = vld [vmem:[%s2841_s8 + $0x6a8] sm:$0xff] }
 0x237   : > { %1384 = vmatpush.msra.mxu2 %v1093_v41  ;;  %1404 = vmatpush.msra.mxu3 %v1109_v42  ;;  %v932_v37 = vmax.f32 %v801_v28, 0.0  ;;  %v1178_v41 = vld [vmem:[%s2841_s8 + $0x778] sm:$0xff]  ;;  %v1191_v42 = vld [vmem:[%s2841_s8 + $0x7e0] sm:$0xff] }
 0x238   : > { %1427 = vmatpush.msrb.mxu0 %v1122_v43  ;;  %1368 = vmatpush.msra.mxu1 %v1073_v44  ;;  %v933_v39 = vmax.f32 %v821_v31, 0.0  ;;  %v1142_v43 = vld [vmem:[%s2841_s8 + $0x658] sm:$0xff]  ;;  %v1161_v44 = vld [vmem:[%s2841_s8 + $0x6f0] sm:$0xff]  ;;  %v1151_v28 = vld [vmem:[%s2841_s8 + $0x6a0] sm:$0xff] }
 0x239   : > { %1385 = vmatpush.msra.mxu2 %v1092_v45  ;;  %1405 = vmatpush.msra.mxu3 %v1108_v46  ;;  %v1177_v45 = vld [vmem:[%s2841_s8 + $0x770] sm:$0xff]  ;;  %v1190_v46 = vld [vmem:[%s2841_s8 + $0x7d8] sm:$0xff]  ;;  %v1180_v31 = vld [vmem:[%s2841_s8 + $0x788] sm:$0xff] }
 0x23a   : > { %1428 = vmatpush.msrb.mxu0 %v1121_v47  ;;  %1369 = vmatpush.msra.mxu1 %v1072_v48  ;;  %v1141_v47 = vld [vmem:[%s2841_s8 + $0x650] sm:$0xff]  ;;  %v1160_v48 = vld [vmem:[%s2841_s8 + $0x6e8] sm:$0xff]  ;;  %v1182_v20 = vld [vmem:[%s2841_s8 + $0x798] sm:$0xff] }
 0x23b   : > { %1386 = vmatpush.msra.mxu2 %v1091_v49  ;;  %1406 = vmatpush.msra.mxu3 %v1107_v50  ;;  %v1176_v49 = vld [vmem:[%s2841_s8 + $0x768] sm:$0xff]  ;;  %v1189_v50 = vld [vmem:[%s2841_s8 + $0x7d0] sm:$0xff] }
 0x23c   : > { %1429 = vmatpush.msrb.mxu0 %v1120_v52  ;;  %1370 = vmatpush.msra.mxu1 %v1071_v53  ;;  %v1140_v52 = vld [vmem:[%s2841_s8 + $0x648] sm:$0xff]  ;;  %v1159_v53 = vld [vmem:[%s2841_s8 + $0x6e0] sm:$0xff] }
 0x23d   : > { %1387 = vmatpush.msra.mxu2 %v1090_v54  ;;  %1407 = vmatpush.msra.mxu3 %v1106_v55  ;;  %v1175_v54 = vld [vmem:[%s2841_s8 + $0x760] sm:$0xff]  ;;  %v1188_v55 = vld [vmem:[%s2841_s8 + $0x7c8] sm:$0xff] }
 0x23e   : > { %1430 = vmatpush.msrb.mxu0 %v1119_v56  ;;  %1371 = vmatpush.msra.mxu1 %v1070_v57  ;;  %v1139_v56 = vld [vmem:[%s2841_s8 + $0x640] sm:$0xff]  ;;  %v1158_v57 = vld [vmem:[%s2841_s8 + $0x6d8] sm:$0xff] }
 0x23f   : > { %1388 = vmatpush.msra.mxu2 %v1089_v59  ;;  %1408 = vmatpush.msra.mxu3 %v1105_v60  ;;  %v1187_v59 = vld [vmem:[%s2841_s8 + $0x7c0] sm:$0xff]  ;;  %v1138_v60 = vld [vmem:[%s2841_s8 + $0x638] sm:$0xff] }
 0x240   : > { %1431 = vmatpush.msrb.mxu0 %v1118_v63  ;;  %1372 = vmatpush.msra.mxu1 %v1069_v0  ;;  %v1186_v63 = vld [vmem:[%s2841_s8 + $0x7b8] sm:$0xff]  ;;  %v1137_v0 = vld [vmem:[%s2841_s8 + $0x630] sm:$0xff] }
 0x241   : > { %1389 = vmatpush.msra.mxu2 %v1088_v2  ;;  %1409 = vmatpush.msra.mxu3 %v1104_v3  ;;  %v1172_v2 = vld [vmem:[%s2841_s8 + $0x748] sm:$0xff]  ;;  %v1185_v3 = vld [vmem:[%s2841_s8 + $0x7b0] sm:$0xff] }
 0x242   : > { %1432 = vmatpush.msrb.mxu0 %v1117_v4  ;;  %1373 = vmatpush.msra.mxu1 %v1068_v6  ;;  %v1136_v4 = vld [vmem:[%s2841_s8 + $0x628] sm:$0xff]  ;;  %v1155_v6 = vld [vmem:[%s2841_s8 + $0x6c0] sm:$0xff] }
 0x243   : > { %1390 = vmatpush.msra.mxu2 %v1087_v8  ;;  %1410 = vmatpush.msra.mxu3 %v1103_v9  ;;  %v1184_v8 = vld [vmem:[%s2841_s8 + $0x7a8] sm:$0xff]  ;;  %v1135_v9 = vld [vmem:[%s2841_s8 + $0x620] sm:$0xff] }
 0x244   : > { %1433 = vmatpush.msrb.mxu0 %v1116_v11  ;;  %1374 = vmatpush.msra.mxu1 %v1067_v12  ;;  %v1170_v11 = vld [vmem:[%s2841_s8 + $0x738] sm:$0xff]  ;;  %v1183_v12 = vld [vmem:[%s2841_s8 + $0x7a0] sm:$0xff] }
 0x245   : > { %1391 = vmatpush.msra.mxu2 %v1086_v13  ;;  %1411 = vmatpush.msra.mxu3 %v1102_v14  ;;  %v1134_v13 = vld [vmem:[%s2841_s8 + $0x618] sm:$0xff]  ;;  %v580_v14 = vperm.slane %v2528_v51, 4 }
 0x246   : > { %1434 = vmatpush.msrb.mxu0 %v1115_v16  ;;  %1375 = vmatmul.f32.vlgmr.msra.gmra.mxu1 %v931_v18  ;;  %v1169_v16 = vld [vmem:[%s2841_s8 + $0x730] sm:$0xff]  ;;  %v860_v18 = vpop.f32.mrf.mxu1 }
 0x247   : > { %1435 = vmatmul.f32.vlgmr.msrb.gmra.mxu0 %v934_v22  ;;  %1439 = vmatpush.msrb.mxu1 %v1146_v21  ;;  %v1133_v21 = vld [vmem:[%s2841_s8 + $0x610] sm:$0xff]  ;;  %v920_v22 = vpop.f32.mrf.mxu0 }
 0x248   : > { %1499 = vmatpush.msra.mxu0 %v1194_v24  ;;  %1392 = vmatpush.msra.mxu2 %v1085_v25  ;;  %v1168_v24 = vld [vmem:[%s2841_s8 + $0x728] sm:$0xff]  ;;  %v1181_v25 = vld [vmem:[%s2841_s8 + $0x790] sm:$0xff] }
 0x249   : > { %1412 = vmatpush.msra.mxu3 %v1101_v26  ;;  %1440 = vmatpush.msrb.mxu1 %v1145_v27  ;;  %v1132_v26 = vld [vmem:[%s2841_s8 + $0x608] sm:$0xff]  ;;  %v861_v27 = vadd.f32 %v860_v18, %v580_v14 }
 0x24a   : > { %1500 = vmatpush.msra.mxu0 %v1193_v29  ;;  %1393 = vmatpush.msra.mxu2 %v1084_v30  ;;  %v1167_v29 = vld [vmem:[%s2841_s8 + $0x720] sm:$0xff]  ;;  %v921_v30 = vadd.f32 %v920_v22, %v583_v19 }
 0x24b   : > { %1413 = vmatpush.msra.mxu3 %v1100_v32  ;;  %1441 = vmatpush.msrb.mxu1 %v1144_v33  ;;  %v1131_v32 = vld [vmem:[%s2841_s8 + $0x600] sm:$0xff]  ;;  %v581_v33 = vperm.slane %v2528_v51, 5 }
 0x24c   : > { %1501 = vmatpush.msra.mxu0 %v1192_v34  ;;  %1394 = vmatpush.msra.mxu2 %v1083_v35  ;;  %v1150_v34 = vld [vmem:[%s2841_s8 + $0x698] sm:$0xff] }
 0x24d   : > { %1414 = vmatpush.msra.mxu3 %v1099_v36  ;;  %1395 = vmatmul.f32.vlgmr.msra.gmra.mxu2 %v932_v37  ;;  %v1166_v35 = vld [vmem:[%s2841_s8 + $0x718] sm:$0xff]  ;;  %v880_v36 = vpop.f32.mrf.mxu2  ;;  %v582_v37 = vperm.slane %v2528_v51, 6  ;;  %v1165_v51 = vld [vmem:[%s2841_s8 + $0x710] sm:$0xff] }
 0x24e   : > { %1415 = vmatmul.f32.vlgmr.msra.gmra.mxu3 %v933_v39  ;;  %1442 = vmatpush.msrb.mxu1 %v1143_v38  ;;  %v1179_v38 = vld [vmem:[%s2841_s8 + $0x780] sm:$0xff]  ;;  %v935_v39 = vmax.f32 %v861_v27, 0.0 }
 0x24f   : > { %1459 = vmatpush.msrb.mxu2 %v1162_v40  ;;  %1479 = vmatpush.msrb.mxu3 %v1178_v41  ;;  %v900_v40 = vpop.f32.mrf.mxu3  ;;  %v1149_v41 = vld [vmem:[%s2841_s8 + $0x690] sm:$0xff] }
 0x250   : > { %1502 = vmatpush.msra.mxu0 %v1191_v42  ;;  %1443 = vmatpush.msrb.mxu1 %v1142_v43  ;;  %v938_v42 = vmax.f32 %v921_v30, 0.0  ;;  %v881_v43 = vadd.f32 %v880_v36, %v581_v33 }
 0x251   : > { %1460 = vmatpush.msrb.mxu2 %v1161_v44  ;;  %1480 = vmatpush.msrb.mxu3 %v1177_v45  ;;  %v1148_v44 = vld [vmem:[%s2841_s8 + $0x688] sm:$0xff]  ;;  %v901_v45 = vadd.f32 %v900_v40, %v582_v37 }
 0x252   : > { %1503 = vmatpush.msra.mxu0 %v1190_v46  ;;  %1444 = vmatpush.msrb.mxu1 %v1141_v47  ;;  %v1164_v46 = vld [vmem:[%s2841_s8 + $0x708] sm:$0xff]  ;;  %v1147_v47 = vld [vmem:[%s2841_s8 + $0x680] sm:$0xff] }
 0x253   : > { %1461 = vmatpush.msrb.mxu2 %v1160_v48  ;;  %1481 = vmatpush.msrb.mxu3 %v1176_v49  ;;  %v1163_v48 = vld [vmem:[%s2841_s8 + $0x700] sm:$0xff]  ;;  %v936_v49 = vmax.f32 %v881_v43, 0.0 }
 0x254   : > { %1504 = vmatpush.msra.mxu0 %v1189_v50  ;;  %1445 = vmatpush.msrb.mxu1 %v1140_v52  ;;  %v937_v50 = vmax.f32 %v901_v45, 0.0  ;;  %v1657_v52 = vld [vmem:[%s2842_s9] ss:$0 sm:$0xff] }
 0x255   : > { %1462 = vmatpush.msrb.mxu2 %v1159_v53  ;;  %1482 = vmatpush.msrb.mxu3 %v1175_v54 }
 0x256   : > { %1505 = vmatpush.msra.mxu0 %v1188_v55  ;;  %1446 = vmatpush.msrb.mxu1 %v1139_v56 }
 0x257   : > { %1463 = vmatpush.msrb.mxu2 %v1158_v57  ;;  %1483 = vmatpush.msrb.mxu3 %v1174_v58 }
 0x258   : > { %1506 = vmatpush.msra.mxu0 %v1187_v59  ;;  %1447 = vmatpush.msrb.mxu1 %v1138_v60 }
 0x259   : > { %1464 = vmatpush.msrb.mxu2 %v1157_v61  ;;  %1484 = vmatpush.msrb.mxu3 %v1173_v62 }
 0x25a   : > { %1507 = vmatpush.msra.mxu0 %v1186_v63  ;;  %1448 = vmatpush.msrb.mxu1 %v1137_v0 }
 0x25b   : > { %1465 = vmatpush.msrb.mxu2 %v1156_v1  ;;  %1485 = vmatpush.msrb.mxu3 %v1172_v2 }
 0x25c   : > { %1508 = vmatpush.msra.mxu0 %v1185_v3  ;;  %1449 = vmatpush.msrb.mxu1 %v1136_v4 }
 0x25d   : > { %1466 = vmatpush.msrb.mxu2 %v1155_v6  ;;  %1486 = vmatpush.msrb.mxu3 %v1171_v7 }
 0x25e   : > { %1509 = vmatpush.msra.mxu0 %v1184_v8  ;;  %1450 = vmatpush.msrb.mxu1 %v1135_v9 }
 0x25f   : > { %1467 = vmatpush.msrb.mxu2 %v1154_v10  ;;  %1487 = vmatpush.msrb.mxu3 %v1170_v11 }
 0x260   : > { %1510 = vmatpush.msra.mxu0 %v1183_v12  ;;  %1451 = vmatpush.msrb.mxu1 %v1134_v13 }
 0x261   : > { %1468 = vmatpush.msrb.mxu2 %v1153_v15  ;;  %1488 = vmatpush.msrb.mxu3 %v1169_v16 }
 0x262   : > { %1511 = vmatpush.msra.mxu0 %v1182_v20  ;;  %1452 = vmatpush.msrb.mxu1 %v1133_v21 }
 0x263   : > { %1469 = vmatpush.msrb.mxu2 %v1152_v23  ;;  %1489 = vmatpush.msrb.mxu3 %v1168_v24 }
 0x264   : > { %1512 = vmatpush.msra.mxu0 %v1181_v25  ;;  %1453 = vmatpush.msrb.mxu1 %v1132_v26 }
 0x265   : > { %1470 = vmatpush.msrb.mxu2 %v1151_v28  ;;  %1490 = vmatpush.msrb.mxu3 %v1167_v29 }
 0x266   : > { %1513 = vmatpush.msra.mxu0 %v1180_v31  ;;  %1454 = vmatpush.msrb.mxu1 %v1131_v32 }
 0x267   : > { %1471 = vmatpush.msrb.mxu2 %v1150_v34  ;;  %1491 = vmatpush.msrb.mxu3 %v1166_v35 }
 0x268   : > { %1514 = vmatpush.msra.mxu0 %v1179_v38  ;;  %1455 = vmatmul.f32.vlgmr.msrb.gmra.mxu1 %v935_v39  ;;  %v1658_v38 = vld [vmem:[%s2843_s10] ss:$0 sm:$0xff] }
 0x269   : > { %1515 = vmatmul.f32.vlgmr.msra.gmra.mxu0 %v938_v42  ;;  %1472 = vmatpush.msrb.mxu2 %v1149_v41 }
 0x26a   : > { %1492 = vmatpush.msrb.mxu3 %v1165_v51 }
 0x26b   : > { %1473 = vmatpush.msrb.mxu2 %v1148_v44 }
 0x26c   : > { %1493 = vmatpush.msrb.mxu3 %v1164_v46 }
 0x26d   : > { %1474 = vmatpush.msrb.mxu2 %v1147_v47 }
 0x26e   : > { %1494 = vmatpush.msrb.mxu3 %v1163_v48  ;;  %1475 = vmatmul.f32.vlgmr.msrb.gmra.mxu2 %v936_v49 }
 0x26f   : > { %1495 = vmatmul.f32.vlgmr.msrb.gmra.mxu3 %v937_v50 }
 0x2a0   : > { %v1216_v53 = vpop.f32.mrf.mxu1 }
 0x2a1   : > { %v1217_v55 = vadd.f32 %v1657_v52, %v1216_v53  ;;  %v1276_v59 = vpop.f32.mrf.mxu0 }
 0x2a9   : > { %v1296_v61 = vpop.f32.mrf.mxu1 }
 0x2aa   : > { %v1356_v3 = vpop.f32.mrf.mxu0 }
 0x2ac   : > { %v1236_v54 = vpop.f32.mrf.mxu2 }
 0x2ad   : > { %v1237_v56 = vadd.f32 %v1236_v54, %v1217_v55  ;;  %v1256_v57 = vpop.f32.mrf.mxu3 }
 0x2af   : > { %v1257_v58 = vadd.f32 %v1256_v57, %v1237_v56 }
 0x2b1   : > { %v1277_v60 = vadd.f32 %v1276_v59, %v1257_v58 }
 0x2b3   : > { %v1297_v62 = vadd.f32 %v1296_v61, %v1277_v60 }
 0x2b6   : > { %v1316_v63 = vpop.f32.mrf.mxu2 }
 0x2b7   : > { %v1317_v0 = vadd.f32 %v1316_v63, %v1297_v62  ;;  %v1336_v1 = vpop.f32.mrf.mxu3 }
 0x2b9   : > { %v1337_v2 = vadd.f32 %v1336_v1, %v1317_v0 }
 0x2bb   : > { %v1357_v6 = vadd.f32 %v1356_v3, %v1337_v2 }
 0x2c3   : > { %v1376_v4 = vpop.f32.mrf.mxu1 }
 0x2c4   : > { %v1377_v8 = vadd.f32 %v1376_v4, %v1357_v6  ;;  %v1436_v12 = vpop.f32.mrf.mxu0 }
 0x2d0   : > { %v1396_v7 = vpop.f32.mrf.mxu2 }
 0x2d1   : > { %v1397_v9 = vadd.f32 %v1396_v7, %v1377_v8  ;;  %v1416_v10 = vpop.f32.mrf.mxu3 }
 0x2d3   : > { %v1417_v11 = vadd.f32 %v1416_v10, %v1397_v9 }
 0x2d5   : > { %v1437_v14 = vadd.f32 %v1436_v12, %v1417_v11 }
 0x2e5   : > { %v1456_v13 = vpop.f32.mrf.mxu1 }
 0x2e6   : > { %v1457_v15 = vadd.f32 %v1456_v13, %v1437_v14  ;;  %v1516_v21 = vpop.f32.mrf.mxu0 }
 0x2f1   : > { %v1476_v16 = vpop.f32.mrf.mxu2 }
 0x2f2   : > { %v1477_v18 = vadd.f32 %v1476_v16, %v1457_v15  ;;  %v1496_v19 = vpop.f32.mrf.mxu3 }
 0x2f4   : > { %v1497_v20 = vadd.f32 %v1496_v19, %v1477_v18 }
 0x2f6   : > { %v1517_v22 = vadd.f32 %v1516_v21, %v1497_v20 }
 0x2f8   : > { %v1519_v23 = vadd.f32 %v1517_v22, %v1887_v5 }
 0x2fa   : > { %v1522_v24 = vsel %vm435_vm0, %v1519_v23, 0.0 }
 0x2fb   : > { %1523 = vadd.xlane.f32.xlu1 %v1522_v24 }
 0x36e   : > { %v1524_v25 = vpop.xlane.xlu1 %1523 }
 0x36f   : > { %v1525_v26 = vmul.f32 %v1524_v25, %v1775_v17 }
 0x371   : > { %v1526_v27 = vsub.f32 %v1519_v23, %v1525_v26 }
 0x373   : > { %v1527_v28 = vmul.f32 %v1526_v27, %v1526_v27 }
 0x375   : > { %v1528_v29 = vsel %vm435_vm0, %v1527_v28, 0.0 }
 0x376   : > { %1529 = vadd.xlane.f32.xlu1 %v1528_v29 }
 0x3e9   : > { %v1530_v30 = vpop.xlane.xlu1 %1529 }
 0x3ea   : > { %v1531_v31 = vmul.f32 %v1530_v30, %v1775_v17  ;;  %v1659_v17 = vld [vmem:[%s2844_s11] ss:$0 sm:$0xff] }
 0x3ec   : > { %v1532_v32 = vadd.f32 1e-05, %v1531_v31 }
 0x3ee   : > { %1664 = vrsqrt.f32 %v1532_v32  ;;  %vm1539_vm6 = vweird.f32 %v1532_v32 }
 0x3f4   : > { %v1665_v33 = vpop.eup %1664 }
 0x3f5   : > { %v1534_v34 = vmul.f32 %v1665_v33, %v1532_v32  ;;  %vm1540_vm5 = vweird.f32 %v1665_v33 }
 0x3f6   : > { %vm1541_vm7 = vmor %vm1539_vm6, %vm1540_vm5 }
 0x3f7   : > { %v1535_v5 = vmul.f32 %v1665_v33, %v1534_v34 }
 0x3f9   : > { %v1536_v35 = vmul.f32 0.5, %v1535_v5 }
 0x3fb   : > { %v1537_v36 = vsub.f32 1.5, %v1536_v35 }
 0x3fd   : > { %v1538_v37 = vmul.f32 %v1665_v33, %v1537_v36 }
 0x3ff   : > { %v1542_v39 = vsel %vm1541_vm7, %v1665_v33, %v1538_v37 }
 0x400   : > { %v1543_v40 = vmul.f32 %v1542_v39, %v1526_v27 }
 0x402   : > { %v1547_v41 = vmul.f32 %v1658_v38, %v1543_v40 }
 0x404   : > { %v1551_v42 = vadd.f32 %v1659_v17, %v1547_v41 }
 0x406   : > { %1552 = vst.msk [vmem:[%s425_s23] sm:$0xff] %vm435_vm0, %v1551_v42 }
 0x407 PF: > { %s22_s21 = sadd.s32 1, %s1672_s21  }
 0x408   : > { %p19_p4 = scmp.ge.s32.totalorder %s22_s21, 4  }
 0x40a   :  { %21 = sbr.rel (!%p19_p4) target bundleno = 1 (0x1), region = 101 }

</bundles_post_ra>
